<compile_context>
chip_gen: v6e
topology: v6e:2x2x1
jax: 0.10.0
libtpu: 0.0.40
codegen_flags: <defaults>
</compile_context>

<pallas_src>
import functools

import jax
import jax.numpy as jnp
import numpy as np
from jax import lax
from jax.experimental import pallas as pl
from jax.experimental.pallas import tpu as pltpu

EPS = 1e-5


# ------------------------------ fused kernel --------------------------------

def _resnet_block_kernel(x_ref, taps_ref, masks_ref, mats_ref, cols_ref,
                         out_ref, *, n_batch, height, width, heads, cg):
    hw = height * width
    nhw = n_batch * hw
    c = x_ref.shape[0]

    x = x_ref[...]                    # (C, NHW)
    masks = masks_ref[...]            # (9, NHW) boundary masks, host-built
    taps = taps_ref[...]              # (2C, 9C): conv1 rows 0:C, conv2 rows C:2C
    mats = mats_ref[...]              # (C, 6C) packed small matrices
    cols = cols_ref[...]              # (C, 9)  packed per-channel columns

    # unpack packed parameter slabs (value slices of already-loaded vregs)
    wmh = mats[:, 0 * c:1 * c]        # (C, C), rows >= heads are zero
    cw1 = mats[0:cg, 1 * c:2 * c]     # (Cg, C)
    wca = mats[:, 2 * c:3 * c]        # (C, C)   concat_conv weight, y-part
    wcb = mats[:, 3 * c:4 * c]        # (C, C)   concat_conv weight, term-part
    cw2 = mats[:, 4 * c:4 * c + cg]   # (C, Cg)
    emt = mats[:, 5 * c:5 * c + heads]  # (C, M) head-indicator

    g1, b1 = cols[:, 0:1], cols[:, 1:2]
    g2, b2 = cols[:, 2:3], cols[:, 3:4]
    cb1 = cols[0:cg, 4:5]
    lng = cols[0:cg, 5:6]
    lnb = cols[0:cg, 6:7]
    cb2 = cols[:, 7:8]
    bc = cols[:, 8:9]

    def conv3x3(z, tap_mat):
        # zero-padded 3x3 conv: stack the 9 rolled+masked slabs along sublanes
        # and do a single K=9C matmul (accumulation stays inside the MXU).
        pieces = []
        k = 0
        for oy in (-1, 0, 1):
            for ox in (-1, 0, 1):
                off = oy * width + ox
                shifted = z if off == 0 else pltpu.roll(z, shift=(-off) % nhw, axis=1)
                pieces.append(shifted if (oy == 0 and ox == 0)
                              else shifted * masks[k:k + 1, :])
                k += 1
        stacked = jnp.concatenate(pieces, axis=0)              # (9C, NHW)
        return jnp.dot(tap_mat, stacked, preferred_element_type=jnp.float32)

    def batchnorm(z, g, b):
        # train-mode BN over (N, H, W) == lane axis; two-pass biased variance
        mean = jnp.mean(z, axis=1, keepdims=True)              # (C, 1)
        d = z - mean
        var = jnp.mean(d * d, axis=1, keepdims=True)
        return d * lax.rsqrt(var + EPS) * g + b

    # ---- resnet_block: conv3x3 -> BN -> ReLU -> conv3x3 -> BN --------------
    y1 = jnp.maximum(batchnorm(conv3x3(x, taps[0:c, :]), g1, b1), 0.0)
    y2 = batchnorm(conv3x3(y1, taps[c:2 * c, :]), g2, b2)

    # ---- attention matmuls hoisted out of the per-sample loop --------------
    # (full 512-lane width; conv_mask bias is constant over spatial positions
    #  and cancels inside the softmax, so it is omitted.)
    logits_full = jnp.dot(wmh, y2, preferred_element_type=jnp.float32)  # (C, NHW)
    lin_full = jnp.dot(wca, y2, preferred_element_type=jnp.float32)     # (C, NHW)

    # ---- _MultiAspectGCAttention + residual add + final ReLU (per sample) --
    for n in range(n_batch):                                   # small static batch
        lo = n * hw
        y_n = y2[:, lo:lo + hw]                                # (C, HW)
        x_n = x[:, lo:lo + hw]                                 # residual identity
        lin_n = lin_full[:, lo:lo + hw]

        # spatial_pool: per-head softmax over spatial positions
        logits = logits_full[0:heads, lo:lo + hw]              # (M, HW)
        m = jnp.max(logits, axis=1, keepdims=True)
        e = jnp.exp(logits - m)
        denom = jnp.sum(e, axis=1, keepdims=True)
        prob = e * pl.reciprocal(denom, approx=True)           # (M, HW)

        # context via MXU contraction over the spatial axis, then a 2-lane
        # masked sum to pick each channel's own head.
        ctx_heads = lax.dot_general(y_n, prob, (((1,), (1,)), ((), ())),
                                    preferred_element_type=jnp.float32)  # (C, M)
        context = jnp.sum(ctx_heads * emt, axis=1, keepdims=True)        # (C, 1)

        # channel_concat_conv: 1x1 conv -> LayerNorm(Cg) -> ReLU -> 1x1 conv
        h1 = jnp.dot(cw1, context, preferred_element_type=jnp.float32) + cb1  # (Cg,1)
        mu = jnp.mean(h1, axis=0, keepdims=True)
        d1 = h1 - mu
        var = jnp.mean(d1 * d1, axis=0, keepdims=True)
        hh = jnp.maximum(d1 * lax.rsqrt(var + EPS) * lng + lnb, 0.0)
        term = jnp.dot(cw2, hh, preferred_element_type=jnp.float32) + cb2     # (C,1)

        # concat([y, term.expand]) -> 1x1 conv == Wa @ y + Wb @ term + b
        out2 = lin_n + jnp.dot(wcb, term, preferred_element_type=jnp.float32) + bc

        # F.layer_norm over [C, H, W] (no affine) + ReLU
        mu2 = jnp.mean(out2, keepdims=True)
        d2 = out2 - mu2
        var2 = jnp.mean(d2 * d2, keepdims=True)
        out3 = jnp.maximum(d2 * lax.rsqrt(var2 + EPS), 0.0)

        # residual add + final ReLU; lane-dense store at a 128-aligned offset
        # (hw = 256 is a multiple of 128 -> unmasked vst)
        out_ref[:, pl.ds(lo, hw)] = jnp.maximum(out3 + x_n, 0.0)


# ------------------------------ JAX glue -------------------------------------

_vmem = functools.partial(pl.BlockSpec, memory_space=pltpu.MemorySpace.VMEM)


def prepare_params(p, *, heads, batch, height, width):
    """Fold parameters into 4 packed, kernel-ready slabs (done once)."""
    o, i = p['w_conv1'].shape[:2]
    if o != i:
        raise ValueError("fused kernel assumes in_channels == mid_channels "
                         "(stride=1, downsample=None): residual adds x directly")
    c = o
    if c % heads != 0:
        raise ValueError("channels must be divisible by multi_attention_heads")
    ch = c // heads
    cg = int(p['ccc_w1'].shape[0])
    np32 = np.float32

    # --- conv taps: (O, I, 3, 3) -> (O, 9I); block k = kh*3+kw = w[:, :, kh, kw]
    def taps(w):
        w = np.asarray(w, np32)
        return np.transpose(w, (0, 2, 3, 1)).reshape(c, 9 * c)

    taps_all = jnp.asarray(
        np.concatenate([taps(p['w_conv1']), taps(p['w_conv2'])], axis=0))  # (2C, 9C)

    # --- boundary masks for the 9 conv taps (zero-padding on the rolled slab)
    s = np.arange(batch * height * width)
    wp, hp = s % width, (s // width) % height
    mh = {-1: hp >= 1, 0: np.ones_like(hp, bool), 1: hp <= height - 2}
    mw = {-1: wp >= 1, 0: np.ones_like(wp, bool), 1: wp <= width - 2}
    masks9 = jnp.asarray(np.stack(
        [(mh[oy] & mw[ox]).astype(np32) for oy in (-1, 0, 1) for ox in (-1, 0, 1)],
        axis=0))                                                           # (9, NHW)

    # --- small left-multiply matrices packed into one (C, 6C) slab
    e_mat = (np.arange(c)[None, :] // ch == np.arange(heads)[:, None]).astype(np32)
    wmh = e_mat * np.tile(np.asarray(p['conv_mask_w'], np32), heads)[None, :]

    def pad_cc(a):
        out = np.zeros((c, c), np32)
        a = np.asarray(a, np32)
        out[:a.shape[0], :a.shape[1]] = a
        return out

    mats = jnp.asarray(np.concatenate([
        pad_cc(wmh),                                  # cols 0:C    per-head mask conv
        pad_cc(np.asarray(p['ccc_w1'], np32)),        # cols C:2C   ccc conv1 (Cg rows)
        pad_cc(np.asarray(p['concat_w'][:, :c])),     # cols 2C:3C  concat_conv, y part
        pad_cc(np.asarray(p['concat_w'][:, c:])),     # cols 3C:4C  concat_conv, term part
        pad_cc(np.asarray(p['ccc_w2'], np32)),        # cols 4C:5C  ccc conv2 (Cg cols)
        pad_cc(e_mat.T),                              # cols 5C:6C  head indicator (C, M)
    ], axis=1))                                                            # (C, 6C)

    # --- per-channel column vectors packed into one (C, 9) slab
    def colv(v):
        out = np.zeros((c, 1), np32)
        v = np.asarray(v, np32).reshape(-1, 1)
        out[:v.shape[0]] = v
        return out

    cols = jnp.asarray(np.concatenate([
        colv(p['bn1_gamma']), colv(p['bn1_beta']),
        colv(p['bn2_gamma']), colv(p['bn2_beta']),
        colv(p['ccc_b1']), colv(p['ccc_ln_g']), colv(p['ccc_ln_b']),
        colv(p['ccc_b2']), colv(p['concat_b']),
    ], axis=1))                                                            # (C, 9)

    # NOTE: conv_mask bias (p['conv_mask_b']) is spatially constant and cancels
    #       exactly in the softmax, so it is not passed to the kernel.
    return (taps_all, masks9, mats, cols)


@functools.partial(jax.jit, static_argnames=("heads", "cg"))
def resnet_block_forward(x_nchw, prepped, *, heads, cg):
    """Fused Pallas implementation of _ResNetBlock.forward
    (stride=1, downsample=None, use_magca=True, in_channels == mid_channels)."""
    n, c, h, w = x_nchw.shape
    nhw = n * h * w
    # TODO(synk): callers that already hold (C, N*H*W) activations can skip these
    # boundary transposes entirely (they cost about as much as the kernel here).
    x2d = jnp.transpose(x_nchw, (1, 0, 2, 3)).reshape(c, nhw).astype(jnp.float32)

    out2d = pl.pallas_call(
        functools.partial(_resnet_block_kernel, n_batch=n, height=h, width=w,
                          heads=heads, cg=cg),
        out_shape=jax.ShapeDtypeStruct((c, nhw), jnp.float32),
        in_specs=[_vmem()] * (1 + len(prepped)),
        out_specs=_vmem(),
    )(x2d, *prepped)

    return jnp.transpose(out2d.reshape(c, n, h, w), (1, 0, 2, 3))


# --------------------------- pure-JAX reference ------------------------------

def reference_forward(x, p, *, heads):
    def conv_bn(z, wt, g, b, relu):
        z = lax.conv_general_dilated(z, wt, (1, 1), ((1, 1), (1, 1)),
                                     dimension_numbers=('NCHW', 'OIHW', 'NCHW'),
                                     precision=lax.Precision.HIGHEST)
        mu = jnp.mean(z, axis=(0, 2, 3), keepdims=True)
        var = jnp.mean((z - mu) ** 2, axis=(0, 2, 3), keepdims=True)
        z = (z - mu) / jnp.sqrt(var + EPS) * g[None, :, None, None] + b[None, :, None, None]
        return jnp.maximum(z, 0.0) if relu else z

    y = conv_bn(x, p['w_conv1'], p['bn1_gamma'], p['bn1_beta'], True)
    y = conv_bn(y, p['w_conv2'], p['bn2_gamma'], p['bn2_beta'], False)

    b_, c, h, w = y.shape
    ch = c // heads
    ym = y.reshape(b_ * heads, ch, h * w)
    logits = jnp.einsum('bcs,c->bs', ym, p['conv_mask_w'],
                        precision=lax.Precision.HIGHEST) + p['conv_mask_b']
    prob = jax.nn.softmax(logits, axis=1)
    ctx = jnp.einsum('bcs,bs->bc', ym, prob, precision=lax.Precision.HIGHEST).reshape(b_, c)

    h1 = ctx @ p['ccc_w1'].T + p['ccc_b1']
    mu = jnp.mean(h1, axis=1, keepdims=True)
    var = jnp.mean((h1 - mu) ** 2, axis=1, keepdims=True)
    hh = jnp.maximum((h1 - mu) / jnp.sqrt(var + EPS) * p['ccc_ln_g'] + p['ccc_ln_b'], 0.0)
    term = hh @ p['ccc_w2'].T + p['ccc_b2']

    cat = jnp.concatenate([y, jnp.broadcast_to(term[:, :, None, None], (b_, c, h, w))], axis=1)
    out2 = jnp.einsum('bihw,oi->bohw', cat, p['concat_w'],
                      precision=lax.Precision.HIGHEST) + p['concat_b'][None, :, None, None]
    mu2 = jnp.mean(out2, axis=(1, 2, 3), keepdims=True)
    var2 = jnp.mean((out2 - mu2) ** 2, axis=(1, 2, 3), keepdims=True)
    out3 = jnp.maximum((out2 - mu2) / jnp.sqrt(var2 + EPS), 0.0)
    return jnp.maximum(out3 + x, 0.0)


# ------------------------------- parameters ----------------------------------

def init_params(key, c, heads, growth):
    ch = c // heads
    cg = int(c * growth)
    ks = jax.random.split(key, 16)

    def rnd(k, shape, scale=1.0):
        return scale * jax.random.normal(k, shape, dtype=jnp.float32)

    return dict(
        w_conv1=rnd(ks[0], (c, c, 3, 3), 1.0 / np.sqrt(9 * c)),
        bn1_gamma=1.0 + 0.1 * rnd(ks[1], (c,)),
        bn1_beta=0.1 * rnd(ks[2], (c,)),
        w_conv2=rnd(ks[3], (c, c, 3, 3), 1.0 / np.sqrt(9 * c)),
        bn2_gamma=1.0 + 0.1 * rnd(ks[4], (c,)),
        bn2_beta=0.1 * rnd(ks[5], (c,)),
        conv_mask_w=rnd(ks[6], (ch,), 1.0 / np.sqrt(ch)),
        conv_mask_b=rnd(ks[7], ()),
        ccc_w1=rnd(ks[8], (cg, c), 1.0 / np.sqrt(c)),
        ccc_b1=0.1 * rnd(ks[9], (cg,)),
        ccc_ln_g=1.0 + 0.1 * rnd(ks[10], (cg,)),
        ccc_ln_b=0.1 * rnd(ks[11], (cg,)),
        ccc_w2=rnd(ks[12], (c, cg), 1.0 / np.sqrt(cg)),
        ccc_b2=0.1 * rnd(ks[13], (c,)),
        concat_w=rnd(ks[14], (c, 2 * c), 1.0 / np.sqrt(2 * c)),
        concat_b=0.1 * rnd(ks[15], (c,)),
    )


if __name__ == "__main__":
    N, C, H, W = 2, 8, 16, 16          # batch, channels (in == mid), spatial
    HEADS, GROWTH = 2, 0.5
    CG = int(C * GROWTH)

    key = jax.random.PRNGKey(0)
    kx, kp = jax.random.split(key)
    x = jax.random.normal(kx, (N, C, H, W), dtype=jnp.float32)
    params = init_params(kp, C, HEADS, GROWTH)

    prepped = prepare_params(params, heads=HEADS, batch=N, height=H, width=W)
    out = jax.block_until_ready(resnet_block_forward(x, prepped, heads=HEADS, cg=CG))
    assert out.shape == (N, C, H, W), out.shape

    ref = jax.block_until_ready(reference_forward(x, params, heads=HEADS))
    max_err = float(jnp.max(jnp.abs(out - ref)))
    assert max_err < 2e-2, f"max abs error vs JAX reference: {max_err}"
    print("KERNEL_OK")
</pallas_src>

<mosaic_0001>
module attributes {stable_mosaic.version = 11 : i64} {
  func.func @_resnet_block_kernel(%arg0: memref<8x512xf32, #tpu.memory_space<vmem>>, %arg1: memref<16x72xf32, #tpu.memory_space<vmem>>, %arg2: memref<9x512xf32, #tpu.memory_space<vmem>>, %arg3: memref<8x48xf32, #tpu.memory_space<vmem>>, %arg4: memref<8x9xf32, #tpu.memory_space<vmem>>, %arg5: memref<8x512xf32, #tpu.memory_space<vmem>>) attributes {dimension_semantics = [], scalar_prefetch = 0 : i64, scratch_operands = 0 : i64, tpu.core_type = #tpu.core_type<tc>} {
    %c0 = arith.constant 0 : index
    %c0_0 = arith.constant 0 : index
    %0 = vector.load %arg0[%c0, %c0_0] : memref<8x512xf32, #tpu.memory_space<vmem>>, vector<8x512xf32>
    %c0_1 = arith.constant 0 : index
    %c0_2 = arith.constant 0 : index
    %1 = vector.load %arg2[%c0_1, %c0_2] : memref<9x512xf32, #tpu.memory_space<vmem>>, vector<9x512xf32>
    %c0_3 = arith.constant 0 : index
    %c0_4 = arith.constant 0 : index
    %2 = vector.load %arg1[%c0_3, %c0_4] : memref<16x72xf32, #tpu.memory_space<vmem>>, vector<16x72xf32>
    %c0_5 = arith.constant 0 : index
    %c0_6 = arith.constant 0 : index
    %3 = vector.load %arg3[%c0_5, %c0_6] : memref<8x48xf32, #tpu.memory_space<vmem>>, vector<8x48xf32>
    %c0_7 = arith.constant 0 : index
    %c0_8 = arith.constant 0 : index
    %4 = vector.load %arg4[%c0_7, %c0_8] : memref<8x9xf32, #tpu.memory_space<vmem>>, vector<8x9xf32>
    %5 = vector.extract_strided_slice %3 {offsets = [0, 0], sizes = [8, 8], strides = [1, 1]} : vector<8x48xf32> to vector<8x8xf32>
    %6 = vector.extract_strided_slice %3 {offsets = [0, 8], sizes = [4, 8], strides = [1, 1]} : vector<8x48xf32> to vector<4x8xf32>
    %7 = vector.extract_strided_slice %3 {offsets = [0, 16], sizes = [8, 8], strides = [1, 1]} : vector<8x48xf32> to vector<8x8xf32>
    %8 = vector.extract_strided_slice %3 {offsets = [0, 24], sizes = [8, 8], strides = [1, 1]} : vector<8x48xf32> to vector<8x8xf32>
    %9 = vector.extract_strided_slice %3 {offsets = [0, 32], sizes = [8, 4], strides = [1, 1]} : vector<8x48xf32> to vector<8x4xf32>
    %10 = vector.extract_strided_slice %3 {offsets = [0, 40], sizes = [8, 2], strides = [1, 1]} : vector<8x48xf32> to vector<8x2xf32>
    %11 = vector.extract_strided_slice %4 {offsets = [0, 0], sizes = [8, 1], strides = [1, 1]} : vector<8x9xf32> to vector<8x1xf32>
    %12 = vector.extract_strided_slice %4 {offsets = [0, 1], sizes = [8, 1], strides = [1, 1]} : vector<8x9xf32> to vector<8x1xf32>
    %13 = vector.extract_strided_slice %4 {offsets = [0, 2], sizes = [8, 1], strides = [1, 1]} : vector<8x9xf32> to vector<8x1xf32>
    %14 = vector.extract_strided_slice %4 {offsets = [0, 3], sizes = [8, 1], strides = [1, 1]} : vector<8x9xf32> to vector<8x1xf32>
    %15 = vector.extract_strided_slice %4 {offsets = [0, 4], sizes = [4, 1], strides = [1, 1]} : vector<8x9xf32> to vector<4x1xf32>
    %16 = vector.extract_strided_slice %4 {offsets = [0, 5], sizes = [4, 1], strides = [1, 1]} : vector<8x9xf32> to vector<4x1xf32>
    %17 = vector.extract_strided_slice %4 {offsets = [0, 6], sizes = [4, 1], strides = [1, 1]} : vector<8x9xf32> to vector<4x1xf32>
    %18 = vector.extract_strided_slice %4 {offsets = [0, 7], sizes = [8, 1], strides = [1, 1]} : vector<8x9xf32> to vector<8x1xf32>
    %19 = vector.extract_strided_slice %4 {offsets = [0, 8], sizes = [8, 1], strides = [1, 1]} : vector<8x9xf32> to vector<8x1xf32>
    %20 = vector.extract_strided_slice %2 {offsets = [0, 0], sizes = [8, 72], strides = [1, 1]} : vector<16x72xf32> to vector<8x72xf32>
    %c17_i32 = arith.constant 17 : i32
    %21 = tpu.dynamic_rotate %0 by %c17_i32 dim 1 : vector<8x512xf32>, i32 -> vector<8x512xf32>
    %22 = vector.extract_strided_slice %1 {offsets = [0, 0], sizes = [1, 512], strides = [1, 1]} : vector<9x512xf32> to vector<1x512xf32>
    %23 = vector.broadcast %22 : vector<1x512xf32> to vector<8x512xf32>
    %24 = arith.mulf %21, %23 : vector<8x512xf32>
    %c16_i32 = arith.constant 16 : i32
    %25 = tpu.dynamic_rotate %0 by %c16_i32 dim 1 : vector<8x512xf32>, i32 -> vector<8x512xf32>
    %26 = vector.extract_strided_slice %1 {offsets = [1, 0], sizes = [1, 512], strides = [1, 1]} : vector<9x512xf32> to vector<1x512xf32>
    %27 = vector.broadcast %26 : vector<1x512xf32> to vector<8x512xf32>
    %28 = arith.mulf %25, %27 : vector<8x512xf32>
    %c15_i32 = arith.constant 15 : i32
    %29 = tpu.dynamic_rotate %0 by %c15_i32 dim 1 : vector<8x512xf32>, i32 -> vector<8x512xf32>
    %30 = vector.extract_strided_slice %1 {offsets = [2, 0], sizes = [1, 512], strides = [1, 1]} : vector<9x512xf32> to vector<1x512xf32>
    %31 = vector.broadcast %30 : vector<1x512xf32> to vector<8x512xf32>
    %32 = arith.mulf %29, %31 : vector<8x512xf32>
    %c1_i32 = arith.constant 1 : i32
    %33 = tpu.dynamic_rotate %0 by %c1_i32 dim 1 : vector<8x512xf32>, i32 -> vector<8x512xf32>
    %34 = vector.extract_strided_slice %1 {offsets = [3, 0], sizes = [1, 512], strides = [1, 1]} : vector<9x512xf32> to vector<1x512xf32>
    %35 = vector.broadcast %34 : vector<1x512xf32> to vector<8x512xf32>
    %36 = arith.mulf %33, %35 : vector<8x512xf32>
    %c511_i32 = arith.constant 511 : i32
    %37 = tpu.dynamic_rotate %0 by %c511_i32 dim 1 : vector<8x512xf32>, i32 -> vector<8x512xf32>
    %38 = vector.extract_strided_slice %1 {offsets = [5, 0], sizes = [1, 512], strides = [1, 1]} : vector<9x512xf32> to vector<1x512xf32>
    %39 = vector.broadcast %38 : vector<1x512xf32> to vector<8x512xf32>
    %40 = arith.mulf %37, %39 : vector<8x512xf32>
    %c497_i32 = arith.constant 497 : i32
    %41 = tpu.dynamic_rotate %0 by %c497_i32 dim 1 : vector<8x512xf32>, i32 -> vector<8x512xf32>
    %42 = vector.extract_strided_slice %1 {offsets = [6, 0], sizes = [1, 512], strides = [1, 1]} : vector<9x512xf32> to vector<1x512xf32>
    %43 = vector.broadcast %42 : vector<1x512xf32> to vector<8x512xf32>
    %44 = arith.mulf %41, %43 : vector<8x512xf32>
    %c496_i32 = arith.constant 496 : i32
    %45 = tpu.dynamic_rotate %0 by %c496_i32 dim 1 : vector<8x512xf32>, i32 -> vector<8x512xf32>
    %46 = vector.extract_strided_slice %1 {offsets = [7, 0], sizes = [1, 512], strides = [1, 1]} : vector<9x512xf32> to vector<1x512xf32>
    %47 = vector.broadcast %46 : vector<1x512xf32> to vector<8x512xf32>
    %48 = arith.mulf %45, %47 : vector<8x512xf32>
    %c495_i32 = arith.constant 495 : i32
    %49 = tpu.dynamic_rotate %0 by %c495_i32 dim 1 : vector<8x512xf32>, i32 -> vector<8x512xf32>
    %50 = vector.extract_strided_slice %1 {offsets = [8, 0], sizes = [1, 512], strides = [1, 1]} : vector<9x512xf32> to vector<1x512xf32>
    %51 = vector.broadcast %50 : vector<1x512xf32> to vector<8x512xf32>
    %52 = arith.mulf %49, %51 : vector<8x512xf32>
    %53 = tpu.concatenate %24, %28, %32, %36, %0, %40, %44, %48, %52 in 0 : vector<8x512xf32>, vector<8x512xf32>, vector<8x512xf32>, vector<8x512xf32>, vector<8x512xf32>, vector<8x512xf32>, vector<8x512xf32>, vector<8x512xf32>, vector<8x512xf32> -> vector<72x512xf32>
    %cst = arith.constant dense<0.000000e+00> : vector<8x512xf32>
    %54 = tpu.matmul %20, %53, %cst {dimension_numbers = #tpu.dot_dimension_numbers<[1], [0], [0], [1], [0, 0, 1, 1], [], []>} : vector<8x72xf32>, vector<72x512xf32>, vector<8x512xf32> -> vector<8x512xf32>
    %cst_9 = arith.constant dense<0.000000e+00> : vector<8xf32>
    %55 = vector.multi_reduction <add>, %54, %cst_9 [1] : vector<8x512xf32> to vector<8xf32>
    %56 = vector.shape_cast %55 : vector<8xf32> to vector<8x1xf32>
    %cst_10 = arith.constant 5.120000e+02 : f32
    %57 = vector.broadcast %cst_10 : f32 to vector<8x1xf32>
    %58 = arith.divf %56, %57 : vector<8x1xf32>
    %59 = vector.broadcast %58 : vector<8x1xf32> to vector<8x512xf32>
    %60 = arith.subf %54, %59 : vector<8x512xf32>
    %61 = arith.mulf %60, %60 : vector<8x512xf32>
    %cst_11 = arith.constant dense<0.000000e+00> : vector<8xf32>
    %62 = vector.multi_reduction <add>, %61, %cst_11 [1] : vector<8x512xf32> to vector<8xf32>
    %63 = vector.shape_cast %62 : vector<8xf32> to vector<8x1xf32>
    %cst_12 = arith.constant 5.120000e+02 : f32
    %64 = vector.broadcast %cst_12 : f32 to vector<8x1xf32>
    %65 = arith.divf %63, %64 : vector<8x1xf32>
    %cst_13 = arith.constant 9.99999974E-6 : f32
    %66 = vector.broadcast %cst_13 : f32 to vector<8x1xf32>
    %67 = arith.addf %65, %66 : vector<8x1xf32>
    %68 = math.rsqrt %67 : vector<8x1xf32>
    %69 = vector.broadcast %68 : vector<8x1xf32> to vector<8x512xf32>
    %70 = arith.mulf %60, %69 : vector<8x512xf32>
    %71 = vector.broadcast %11 : vector<8x1xf32> to vector<8x512xf32>
    %72 = arith.mulf %70, %71 : vector<8x512xf32>
    %73 = vector.broadcast %12 : vector<8x1xf32> to vector<8x512xf32>
    %74 = arith.addf %72, %73 : vector<8x512xf32>
    %cst_14 = arith.constant 0.000000e+00 : f32
    %75 = vector.broadcast %cst_14 : f32 to vector<8x512xf32>
    %76 = arith.maximumf %74, %75 : vector<8x512xf32>
    %77 = vector.extract_strided_slice %2 {offsets = [8, 0], sizes = [8, 72], strides = [1, 1]} : vector<16x72xf32> to vector<8x72xf32>
    %c17_i32_15 = arith.constant 17 : i32
    %78 = tpu.dynamic_rotate %76 by %c17_i32_15 dim 1 : vector<8x512xf32>, i32 -> vector<8x512xf32>
    %79 = vector.extract_strided_slice %1 {offsets = [0, 0], sizes = [1, 512], strides = [1, 1]} : vector<9x512xf32> to vector<1x512xf32>
    %80 = vector.broadcast %79 : vector<1x512xf32> to vector<8x512xf32>
    %81 = arith.mulf %78, %80 : vector<8x512xf32>
    %c16_i32_16 = arith.constant 16 : i32
    %82 = tpu.dynamic_rotate %76 by %c16_i32_16 dim 1 : vector<8x512xf32>, i32 -> vector<8x512xf32>
    %83 = vector.extract_strided_slice %1 {offsets = [1, 0], sizes = [1, 512], strides = [1, 1]} : vector<9x512xf32> to vector<1x512xf32>
    %84 = vector.broadcast %83 : vector<1x512xf32> to vector<8x512xf32>
    %85 = arith.mulf %82, %84 : vector<8x512xf32>
    %c15_i32_17 = arith.constant 15 : i32
    %86 = tpu.dynamic_rotate %76 by %c15_i32_17 dim 1 : vector<8x512xf32>, i32 -> vector<8x512xf32>
    %87 = vector.extract_strided_slice %1 {offsets = [2, 0], sizes = [1, 512], strides = [1, 1]} : vector<9x512xf32> to vector<1x512xf32>
    %88 = vector.broadcast %87 : vector<1x512xf32> to vector<8x512xf32>
    %89 = arith.mulf %86, %88 : vector<8x512xf32>
    %c1_i32_18 = arith.constant 1 : i32
    %90 = tpu.dynamic_rotate %76 by %c1_i32_18 dim 1 : vector<8x512xf32>, i32 -> vector<8x512xf32>
    %91 = vector.extract_strided_slice %1 {offsets = [3, 0], sizes = [1, 512], strides = [1, 1]} : vector<9x512xf32> to vector<1x512xf32>
    %92 = vector.broadcast %91 : vector<1x512xf32> to vector<8x512xf32>
    %93 = arith.mulf %90, %92 : vector<8x512xf32>
    %c511_i32_19 = arith.constant 511 : i32
    %94 = tpu.dynamic_rotate %76 by %c511_i32_19 dim 1 : vector<8x512xf32>, i32 -> vector<8x512xf32>
    %95 = vector.extract_strided_slice %1 {offsets = [5, 0], sizes = [1, 512], strides = [1, 1]} : vector<9x512xf32> to vector<1x512xf32>
    %96 = vector.broadcast %95 : vector<1x512xf32> to vector<8x512xf32>
    %97 = arith.mulf %94, %96 : vector<8x512xf32>
    %c497_i32_20 = arith.constant 497 : i32
    %98 = tpu.dynamic_rotate %76 by %c497_i32_20 dim 1 : vector<8x512xf32>, i32 -> vector<8x512xf32>
    %99 = vector.extract_strided_slice %1 {offsets = [6, 0], sizes = [1, 512], strides = [1, 1]} : vector<9x512xf32> to vector<1x512xf32>
    %100 = vector.broadcast %99 : vector<1x512xf32> to vector<8x512xf32>
    %101 = arith.mulf %98, %100 : vector<8x512xf32>
    %c496_i32_21 = arith.constant 496 : i32
    %102 = tpu.dynamic_rotate %76 by %c496_i32_21 dim 1 : vector<8x512xf32>, i32 -> vector<8x512xf32>
    %103 = vector.extract_strided_slice %1 {offsets = [7, 0], sizes = [1, 512], strides = [1, 1]} : vector<9x512xf32> to vector<1x512xf32>
    %104 = vector.broadcast %103 : vector<1x512xf32> to vector<8x512xf32>
    %105 = arith.mulf %102, %104 : vector<8x512xf32>
    %c495_i32_22 = arith.constant 495 : i32
    %106 = tpu.dynamic_rotate %76 by %c495_i32_22 dim 1 : vector<8x512xf32>, i32 -> vector<8x512xf32>
    %107 = vector.extract_strided_slice %1 {offsets = [8, 0], sizes = [1, 512], strides = [1, 1]} : vector<9x512xf32> to vector<1x512xf32>
    %108 = vector.broadcast %107 : vector<1x512xf32> to vector<8x512xf32>
    %109 = arith.mulf %106, %108 : vector<8x512xf32>
    %110 = tpu.concatenate %81, %85, %89, %93, %76, %97, %101, %105, %109 in 0 : vector<8x512xf32>, vector<8x512xf32>, vector<8x512xf32>, vector<8x512xf32>, vector<8x512xf32>, vector<8x512xf32>, vector<8x512xf32>, vector<8x512xf32>, vector<8x512xf32> -> vector<72x512xf32>
    %cst_23 = arith.constant dense<0.000000e+00> : vector<8x512xf32>
    %111 = tpu.matmul %77, %110, %cst_23 {dimension_numbers = #tpu.dot_dimension_numbers<[1], [0], [0], [1], [0, 0, 1, 1], [], []>} : vector<8x72xf32>, vector<72x512xf32>, vector<8x512xf32> -> vector<8x512xf32>
    %cst_24 = arith.constant dense<0.000000e+00> : vector<8xf32>
    %112 = vector.multi_reduction <add>, %111, %cst_24 [1] : vector<8x512xf32> to vector<8xf32>
    %113 = vector.shape_cast %112 : vector<8xf32> to vector<8x1xf32>
    %cst_25 = arith.constant 5.120000e+02 : f32
    %114 = vector.broadcast %cst_25 : f32 to vector<8x1xf32>
    %115 = arith.divf %113, %114 : vector<8x1xf32>
    %116 = vector.broadcast %115 : vector<8x1xf32> to vector<8x512xf32>
    %117 = arith.subf %111, %116 : vector<8x512xf32>
    %118 = arith.mulf %117, %117 : vector<8x512xf32>
    %cst_26 = arith.constant dense<0.000000e+00> : vector<8xf32>
    %119 = vector.multi_reduction <add>, %118, %cst_26 [1] : vector<8x512xf32> to vector<8xf32>
    %120 = vector.shape_cast %119 : vector<8xf32> to vector<8x1xf32>
    %cst_27 = arith.constant 5.120000e+02 : f32
    %121 = vector.broadcast %cst_27 : f32 to vector<8x1xf32>
    %122 = arith.divf %120, %121 : vector<8x1xf32>
    %cst_28 = arith.constant 9.99999974E-6 : f32
    %123 = vector.broadcast %cst_28 : f32 to vector<8x1xf32>
    %124 = arith.addf %122, %123 : vector<8x1xf32>
    %125 = math.rsqrt %124 : vector<8x1xf32>
    %126 = vector.broadcast %125 : vector<8x1xf32> to vector<8x512xf32>
    %127 = arith.mulf %117, %126 : vector<8x512xf32>
    %128 = vector.broadcast %13 : vector<8x1xf32> to vector<8x512xf32>
    %129 = arith.mulf %127, %128 : vector<8x512xf32>
    %130 = vector.broadcast %14 : vector<8x1xf32> to vector<8x512xf32>
    %131 = arith.addf %129, %130 : vector<8x512xf32>
    %cst_29 = arith.constant dense<0.000000e+00> : vector<8x512xf32>
    %132 = tpu.matmul %5, %131, %cst_29 {dimension_numbers = #tpu.dot_dimension_numbers<[1], [0], [0], [1], [0, 0, 1, 1], [], []>} : vector<8x8xf32>, vector<8x512xf32>, vector<8x512xf32> -> vector<8x512xf32>
    %cst_30 = arith.constant dense<0.000000e+00> : vector<8x512xf32>
    %133 = tpu.matmul %7, %131, %cst_30 {dimension_numbers = #tpu.dot_dimension_numbers<[1], [0], [0], [1], [0, 0, 1, 1], [], []>} : vector<8x8xf32>, vector<8x512xf32>, vector<8x512xf32> -> vector<8x512xf32>
    %134 = vector.extract_strided_slice %131 {offsets = [0, 0], sizes = [8, 256], strides = [1, 1]} : vector<8x512xf32> to vector<8x256xf32>
    %135 = vector.extract_strided_slice %0 {offsets = [0, 0], sizes = [8, 256], strides = [1, 1]} : vector<8x512xf32> to vector<8x256xf32>
    %136 = vector.extract_strided_slice %133 {offsets = [0, 0], sizes = [8, 256], strides = [1, 1]} : vector<8x512xf32> to vector<8x256xf32>
    %137 = vector.extract_strided_slice %132 {offsets = [0, 0], sizes = [2, 256], strides = [1, 1]} : vector<8x512xf32> to vector<2x256xf32>
    %cst_31 = arith.constant dense<0xFF800000> : vector<2xf32>
    %138 = vector.multi_reduction <maximumf>, %137, %cst_31 [1] : vector<2x256xf32> to vector<2xf32>
    %139 = vector.shape_cast %138 : vector<2xf32> to vector<2x1xf32>
    %140 = vector.broadcast %139 : vector<2x1xf32> to vector<2x256xf32>
    %141 = arith.subf %137, %140 : vector<2x256xf32>
    %142 = math.exp %141 : vector<2x256xf32>
    %cst_32 = arith.constant dense<0.000000e+00> : vector<2xf32>
    %143 = vector.multi_reduction <add>, %142, %cst_32 [1] : vector<2x256xf32> to vector<2xf32>
    %144 = vector.shape_cast %143 : vector<2xf32> to vector<2x1xf32>
    %145 = tpu.reciprocal %144 {approx = true} : vector<2x1xf32> -> vector<2x1xf32>
    %146 = vector.broadcast %145 : vector<2x1xf32> to vector<2x256xf32>
    %147 = arith.mulf %142, %146 : vector<2x256xf32>
    %cst_33 = arith.constant dense<0.000000e+00> : vector<8x2xf32>
    %148 = tpu.matmul %134, %147, %cst_33 {dimension_numbers = #tpu.dot_dimension_numbers<[1], [1], [0], [0], [0, 0, 1, 0], [], []>} : vector<8x256xf32>, vector<2x256xf32>, vector<8x2xf32> -> vector<8x2xf32>
    %149 = arith.mulf %148, %10 : vector<8x2xf32>
    %cst_34 = arith.constant dense<0.000000e+00> : vector<8xf32>
    %150 = vector.multi_reduction <add>, %149, %cst_34 [1] : vector<8x2xf32> to vector<8xf32>
    %151 = vector.shape_cast %150 : vector<8xf32> to vector<8x1xf32>
    %cst_35 = arith.constant dense<0.000000e+00> : vector<4x1xf32>
    %152 = tpu.matmul %6, %151, %cst_35 {dimension_numbers = #tpu.dot_dimension_numbers<[1], [0], [0], [1], [0, 0, 1, 1], [], []>} : vector<4x8xf32>, vector<8x1xf32>, vector<4x1xf32> -> vector<4x1xf32>
    %153 = arith.addf %152, %15 : vector<4x1xf32>
    %cst_36 = arith.constant dense<0.000000e+00> : vector<1xf32>
    %154 = vector.multi_reduction <add>, %153, %cst_36 [0] : vector<4x1xf32> to vector<1xf32>
    %155 = vector.shape_cast %154 : vector<1xf32> to vector<1x1xf32>
    %cst_37 = arith.constant 4.000000e+00 : f32
    %156 = vector.broadcast %cst_37 : f32 to vector<1x1xf32>
    %157 = arith.divf %155, %156 : vector<1x1xf32>
    %158 = vector.broadcast %157 : vector<1x1xf32> to vector<4x1xf32>
    %159 = arith.subf %153, %158 : vector<4x1xf32>
    %160 = arith.mulf %159, %159 : vector<4x1xf32>
    %cst_38 = arith.constant dense<0.000000e+00> : vector<1xf32>
    %161 = vector.multi_reduction <add>, %160, %cst_38 [0] : vector<4x1xf32> to vector<1xf32>
    %162 = vector.shape_cast %161 : vector<1xf32> to vector<1x1xf32>
    %cst_39 = arith.constant 4.000000e+00 : f32
    %163 = vector.broadcast %cst_39 : f32 to vector<1x1xf32>
    %164 = arith.divf %162, %163 : vector<1x1xf32>
    %cst_40 = arith.constant 9.99999974E-6 : f32
    %165 = vector.broadcast %cst_40 : f32 to vector<1x1xf32>
    %166 = arith.addf %164, %165 : vector<1x1xf32>
    %167 = math.rsqrt %166 : vector<1x1xf32>
    %168 = vector.broadcast %167 : vector<1x1xf32> to vector<4x1xf32>
    %169 = arith.mulf %159, %168 : vector<4x1xf32>
    %170 = arith.mulf %169, %16 : vector<4x1xf32>
    %171 = arith.addf %170, %17 : vector<4x1xf32>
    %cst_41 = arith.constant 0.000000e+00 : f32
    %172 = vector.broadcast %cst_41 : f32 to vector<4x1xf32>
    %173 = arith.maximumf %171, %172 : vector<4x1xf32>
    %cst_42 = arith.constant dense<0.000000e+00> : vector<8x1xf32>
    %174 = tpu.matmul %9, %173, %cst_42 {dimension_numbers = #tpu.dot_dimension_numbers<[1], [0], [0], [1], [0, 0, 1, 1], [], []>} : vector<8x4xf32>, vector<4x1xf32>, vector<8x1xf32> -> vector<8x1xf32>
    %175 = arith.addf %174, %18 : vector<8x1xf32>
    %cst_43 = arith.constant dense<0.000000e+00> : vector<8x1xf32>
    %176 = tpu.matmul %8, %175, %cst_43 {dimension_numbers = #tpu.dot_dimension_numbers<[1], [0], [0], [1], [0, 0, 1, 1], [], []>} : vector<8x8xf32>, vector<8x1xf32>, vector<8x1xf32> -> vector<8x1xf32>
    %177 = vector.broadcast %176 : vector<8x1xf32> to vector<8x256xf32>
    %178 = arith.addf %136, %177 : vector<8x256xf32>
    %179 = vector.broadcast %19 : vector<8x1xf32> to vector<8x256xf32>
    %180 = arith.addf %178, %179 : vector<8x256xf32>
    %181 = vector.shape_cast %180 : vector<8x256xf32> to vector<1x8x256xf32>
    %cst_44 = arith.constant dense<0.000000e+00> : vector<1xf32>
    %182 = vector.multi_reduction <add>, %181, %cst_44 [1, 2] : vector<1x8x256xf32> to vector<1xf32>
    %183 = vector.shape_cast %182 : vector<1xf32> to vector<1x1x1xf32>
    %184 = vector.extract %183[0, 0, 0] : f32 from vector<1x1x1xf32>
    %185 = vector.broadcast %184 : f32 to vector<1x1xf32>
    %cst_45 = arith.constant 2.048000e+03 : f32
    %186 = vector.broadcast %cst_45 : f32 to vector<1x1xf32>
    %187 = arith.divf %185, %186 : vector<1x1xf32>
    %188 = vector.broadcast %187 : vector<1x1xf32> to vector<8x256xf32>
    %189 = arith.subf %180, %188 : vector<8x256xf32>
    %190 = arith.mulf %189, %189 : vector<8x256xf32>
    %191 = vector.shape_cast %190 : vector<8x256xf32> to vector<1x8x256xf32>
    %cst_46 = arith.constant dense<0.000000e+00> : vector<1xf32>
    %192 = vector.multi_reduction <add>, %191, %cst_46 [1, 2] : vector<1x8x256xf32> to vector<1xf32>
    %193 = vector.shape_cast %192 : vector<1xf32> to vector<1x1x1xf32>
    %194 = vector.extract %193[0, 0, 0] : f32 from vector<1x1x1xf32>
    %195 = vector.broadcast %194 : f32 to vector<1x1xf32>
    %cst_47 = arith.constant 2.048000e+03 : f32
    %196 = vector.broadcast %cst_47 : f32 to vector<1x1xf32>
    %197 = arith.divf %195, %196 : vector<1x1xf32>
    %cst_48 = arith.constant 9.99999974E-6 : f32
    %198 = vector.broadcast %cst_48 : f32 to vector<1x1xf32>
    %199 = arith.addf %197, %198 : vector<1x1xf32>
    %200 = math.rsqrt %199 : vector<1x1xf32>
    %201 = vector.broadcast %200 : vector<1x1xf32> to vector<8x256xf32>
    %202 = arith.mulf %189, %201 : vector<8x256xf32>
    %cst_49 = arith.constant 0.000000e+00 : f32
    %203 = vector.broadcast %cst_49 : f32 to vector<8x256xf32>
    %204 = arith.maximumf %202, %203 : vector<8x256xf32>
    %205 = arith.addf %204, %135 : vector<8x256xf32>
    %cst_50 = arith.constant 0.000000e+00 : f32
    %206 = vector.broadcast %cst_50 : f32 to vector<8x256xf32>
    %207 = arith.maximumf %205, %206 : vector<8x256xf32>
    %c0_51 = arith.constant 0 : index
    %c0_52 = arith.constant 0 : index
    %208 = vector.load %arg5[%c0_51, %c0_52] : memref<8x512xf32, #tpu.memory_space<vmem>>, vector<8x256xf32>
    tpu.vector_store %arg5[%c0_51, %c0_52], %207 {strides = array<i32>} : memref<8x512xf32, #tpu.memory_space<vmem>>, vector<8x256xf32>,
    %209 = vector.extract_strided_slice %131 {offsets = [0, 256], sizes = [8, 256], strides = [1, 1]} : vector<8x512xf32> to vector<8x256xf32>
    %210 = vector.extract_strided_slice %0 {offsets = [0, 256], sizes = [8, 256], strides = [1, 1]} : vector<8x512xf32> to vector<8x256xf32>
    %211 = vector.extract_strided_slice %133 {offsets = [0, 256], sizes = [8, 256], strides = [1, 1]} : vector<8x512xf32> to vector<8x256xf32>
    %212 = vector.extract_strided_slice %132 {offsets = [0, 256], sizes = [2, 256], strides = [1, 1]} : vector<8x512xf32> to vector<2x256xf32>
    %cst_53 = arith.constant dense<0xFF800000> : vector<2xf32>
    %213 = vector.multi_reduction <maximumf>, %212, %cst_53 [1] : vector<2x256xf32> to vector<2xf32>
    %214 = vector.shape_cast %213 : vector<2xf32> to vector<2x1xf32>
    %215 = vector.broadcast %214 : vector<2x1xf32> to vector<2x256xf32>
    %216 = arith.subf %212, %215 : vector<2x256xf32>
    %217 = math.exp %216 : vector<2x256xf32>
    %cst_54 = arith.constant dense<0.000000e+00> : vector<2xf32>
    %218 = vector.multi_reduction <add>, %217, %cst_54 [1] : vector<2x256xf32> to vector<2xf32>
    %219 = vector.shape_cast %218 : vector<2xf32> to vector<2x1xf32>
    %220 = tpu.reciprocal %219 {approx = true} : vector<2x1xf32> -> vector<2x1xf32>
    %221 = vector.broadcast %220 : vector<2x1xf32> to vector<2x256xf32>
    %222 = arith.mulf %217, %221 : vector<2x256xf32>
    %cst_55 = arith.constant dense<0.000000e+00> : vector<8x2xf32>
    %223 = tpu.matmul %209, %222, %cst_55 {dimension_numbers = #tpu.dot_dimension_numbers<[1], [1], [0], [0], [0, 0, 1, 0], [], []>} : vector<8x256xf32>, vector<2x256xf32>, vector<8x2xf32> -> vector<8x2xf32>
    %224 = arith.mulf %223, %10 : vector<8x2xf32>
    %cst_56 = arith.constant dense<0.000000e+00> : vector<8xf32>
    %225 = vector.multi_reduction <add>, %224, %cst_56 [1] : vector<8x2xf32> to vector<8xf32>
    %226 = vector.shape_cast %225 : vector<8xf32> to vector<8x1xf32>
    %cst_57 = arith.constant dense<0.000000e+00> : vector<4x1xf32>
    %227 = tpu.matmul %6, %226, %cst_57 {dimension_numbers = #tpu.dot_dimension_numbers<[1], [0], [0], [1], [0, 0, 1, 1], [], []>} : vector<4x8xf32>, vector<8x1xf32>, vector<4x1xf32> -> vector<4x1xf32>
    %228 = arith.addf %227, %15 : vector<4x1xf32>
    %cst_58 = arith.constant dense<0.000000e+00> : vector<1xf32>
    %229 = vector.multi_reduction <add>, %228, %cst_58 [0] : vector<4x1xf32> to vector<1xf32>
    %230 = vector.shape_cast %229 : vector<1xf32> to vector<1x1xf32>
    %cst_59 = arith.constant 4.000000e+00 : f32
    %231 = vector.broadcast %cst_59 : f32 to vector<1x1xf32>
    %232 = arith.divf %230, %231 : vector<1x1xf32>
    %233 = vector.broadcast %232 : vector<1x1xf32> to vector<4x1xf32>
    %234 = arith.subf %228, %233 : vector<4x1xf32>
    %235 = arith.mulf %234, %234 : vector<4x1xf32>
    %cst_60 = arith.constant dense<0.000000e+00> : vector<1xf32>
    %236 = vector.multi_reduction <add>, %235, %cst_60 [0] : vector<4x1xf32> to vector<1xf32>
    %237 = vector.shape_cast %236 : vector<1xf32> to vector<1x1xf32>
    %cst_61 = arith.constant 4.000000e+00 : f32
    %238 = vector.broadcast %cst_61 : f32 to vector<1x1xf32>
    %239 = arith.divf %237, %238 : vector<1x1xf32>
    %cst_62 = arith.constant 9.99999974E-6 : f32
    %240 = vector.broadcast %cst_62 : f32 to vector<1x1xf32>
    %241 = arith.addf %239, %240 : vector<1x1xf32>
    %242 = math.rsqrt %241 : vector<1x1xf32>
    %243 = vector.broadcast %242 : vector<1x1xf32> to vector<4x1xf32>
    %244 = arith.mulf %234, %243 : vector<4x1xf32>
    %245 = arith.mulf %244, %16 : vector<4x1xf32>
    %246 = arith.addf %245, %17 : vector<4x1xf32>
    %cst_63 = arith.constant 0.000000e+00 : f32
    %247 = vector.broadcast %cst_63 : f32 to vector<4x1xf32>
    %248 = arith.maximumf %246, %247 : vector<4x1xf32>
    %cst_64 = arith.constant dense<0.000000e+00> : vector<8x1xf32>
    %249 = tpu.matmul %9, %248, %cst_64 {dimension_numbers = #tpu.dot_dimension_numbers<[1], [0], [0], [1], [0, 0, 1, 1], [], []>} : vector<8x4xf32>, vector<4x1xf32>, vector<8x1xf32> -> vector<8x1xf32>
    %250 = arith.addf %249, %18 : vector<8x1xf32>
    %cst_65 = arith.constant dense<0.000000e+00> : vector<8x1xf32>
    %251 = tpu.matmul %8, %250, %cst_65 {dimension_numbers = #tpu.dot_dimension_numbers<[1], [0], [0], [1], [0, 0, 1, 1], [], []>} : vector<8x8xf32>, vector<8x1xf32>, vector<8x1xf32> -> vector<8x1xf32>
    %252 = vector.broadcast %251 : vector<8x1xf32> to vector<8x256xf32>
    %253 = arith.addf %211, %252 : vector<8x256xf32>
    %254 = vector.broadcast %19 : vector<8x1xf32> to vector<8x256xf32>
    %255 = arith.addf %253, %254 : vector<8x256xf32>
    %256 = vector.shape_cast %255 : vector<8x256xf32> to vector<1x8x256xf32>
    %cst_66 = arith.constant dense<0.000000e+00> : vector<1xf32>
    %257 = vector.multi_reduction <add>, %256, %cst_66 [1, 2] : vector<1x8x256xf32> to vector<1xf32>
    %258 = vector.shape_cast %257 : vector<1xf32> to vector<1x1x1xf32>
    %259 = vector.extract %258[0, 0, 0] : f32 from vector<1x1x1xf32>
    %260 = vector.broadcast %259 : f32 to vector<1x1xf32>
    %cst_67 = arith.constant 2.048000e+03 : f32
    %261 = vector.broadcast %cst_67 : f32 to vector<1x1xf32>
    %262 = arith.divf %260, %261 : vector<1x1xf32>
    %263 = vector.broadcast %262 : vector<1x1xf32> to vector<8x256xf32>
    %264 = arith.subf %255, %263 : vector<8x256xf32>
    %265 = arith.mulf %264, %264 : vector<8x256xf32>
    %266 = vector.shape_cast %265 : vector<8x256xf32> to vector<1x8x256xf32>
    %cst_68 = arith.constant dense<0.000000e+00> : vector<1xf32>
    %267 = vector.multi_reduction <add>, %266, %cst_68 [1, 2] : vector<1x8x256xf32> to vector<1xf32>
    %268 = vector.shape_cast %267 : vector<1xf32> to vector<1x1x1xf32>
    %269 = vector.extract %268[0, 0, 0] : f32 from vector<1x1x1xf32>
    %270 = vector.broadcast %269 : f32 to vector<1x1xf32>
    %cst_69 = arith.constant 2.048000e+03 : f32
    %271 = vector.broadcast %cst_69 : f32 to vector<1x1xf32>
    %272 = arith.divf %270, %271 : vector<1x1xf32>
    %cst_70 = arith.constant 9.99999974E-6 : f32
    %273 = vector.broadcast %cst_70 : f32 to vector<1x1xf32>
    %274 = arith.addf %272, %273 : vector<1x1xf32>
    %275 = math.rsqrt %274 : vector<1x1xf32>
    %276 = vector.broadcast %275 : vector<1x1xf32> to vector<8x256xf32>
    %277 = arith.mulf %264, %276 : vector<8x256xf32>
    %cst_71 = arith.constant 0.000000e+00 : f32
    %278 = vector.broadcast %cst_71 : f32 to vector<8x256xf32>
    %279 = arith.maximumf %277, %278 : vector<8x256xf32>
    %280 = arith.addf %279, %210 : vector<8x256xf32>
    %cst_72 = arith.constant 0.000000e+00 : f32
    %281 = vector.broadcast %cst_72 : f32 to vector<8x256xf32>
    %282 = arith.maximumf %280, %281 : vector<8x256xf32>
    %c0_73 = arith.constant 0 : index
    %c256 = arith.constant 256 : index
    %283 = vector.load %arg5[%c0_73, %c256] : memref<8x512xf32, #tpu.memory_space<vmem>>, vector<8x256xf32>
    tpu.vector_store %arg5[%c0_73, %c256], %282 {strides = array<i32>} : memref<8x512xf32, #tpu.memory_space<vmem>>, vector<8x256xf32>,
    return
  }
}

</mosaic_0001>

<bundles_post_ra>
// kernel: resnet_block_forward.1
= control target key start
LH: loop header
LB: loop body
LE: loop exit
PB: predicated region body
PF: predicated region fallthrough
CT: control target
= control target key end

     0   :  { %s2032_s22 = smov 111   ;;  %s2033_s25 = smov 112   ;;  %v2039_v4 = vmov 0.0   ;;  %v44_v5 = vlaneseq  ;;  %vm302_vm8 = vcmask 588800   ;;  %vm811_vm9 = vcmask 64512   ;;  %s2765_s0 = inlined_call_operand.vmem [shape: f32[8,512], index: 0, kind: input, shape index: {}]   ;;  %s2766_s2 = inlined_call_operand.vmem [shape: f32[9,512], index: 2, kind: input, shape index: {}]   ;;  %s2767_s1 = inlined_call_operand.vmem [shape: f32[16,72], index: 1, kind: input, shape index: {}]   ;;  %s2768_s4 = inlined_call_operand.vmem [shape: f32[8,9], index: 4, kind: input, shape index: {}]   ;;  %s2769_s3 = inlined_call_operand.vmem [shape: f32[8,48], index: 3, kind: input, shape index: {}]   ;;  %s2770_s5 = inlined_call_operand.vmem [shape: f32[8,512], index: 5, kind: output, shape index: {}]  }
   0x1   :  { %v2088_v0 = vld [vmem:[%s2765_s0 + $0x8] sm:$0xff]  ;;  %v2093_v1 = vld [vmem:[%s2765_s0] sm:$0xff]  ;;  %v2102_v2 = vld [vmem:[%s2765_s0 + $0x10] sm:$0xff]  ;;  %s2034_s26 = smov 113   ;;  %s2035_s29 = smov 127   ;;  %370 = vmatprep.mubr.f32.mxu0 %v2039_v4  ;;  %441 = vmatprep.mubr.f32.mxu1 %v2039_v4  ;;  %vm1103_vm10 = vcmask 1041408  }
   0x2   :  { %271 = vrot.lane.b32.xlu0 %v2088_v0, %s2032_s22  ;;  %269 = vrot.lane.b32.xlu1 %v2093_v1, %s2032_s22  ;;  %v2119_v3 = vld [vmem:[%s2765_s0 + $0x18] sm:$0xff]  ;;  %s2036_s30 = smov 1   ;;  %s2037_s6 = smov 15   ;;  %v2171_v6 = vand.u32 127, %v44_v5  ;;  %v2173_v7 = vshrl.u32 %v44_v5, 7  ;;  %v2185_v12 = vld [vmem:[%s2766_s2 + $0x8] sm:$0xff] }
   0x3   :  { %s2038_s7 = smov 16   ;;  %s2040_s8 = smov 17   ;;  %v2180_v11 = vld [vmem:[%s2766_s2 + $0x28] ss:$0 sm:$0xff]  ;;  %v2190_v13 = vld [vmem:[%s2766_s2] sm:$0xff]  ;;  %v2254_v48 = vld [vmem:[%s2766_s2 + $0x10] sm:$0xff] }
   0x4   :  { %vm277_vm0 = vcmp.lt.s32.totalorder %v2171_v6, 111  ;;  %v251_v10 = vsub.s32 7, %v2173_v7  ;;  %v2195_v16 = vld [vmem:[%s2766_s2 + $0x20] ss:$0 sm:$0xff]  ;;  %vm244_vm1 = vcmp.lt.s32.totalorder %v2171_v6, 112  ;;  %v218_v22 = vsub.s32 6, %v2173_v7 }
   0x5   :  { %vm211_vm2 = vcmp.lt.s32.totalorder %v2171_v6, 113  ;;  %v185_v36 = vsub.s32 5, %v2173_v7  ;;  %v2231_v37 = vld [vmem:[%s2766_s2 + $0x38] ss:$0 sm:$0xff]  ;;  %v2236_v38 = vld [vmem:[%s2766_s2 + $0x30] ss:$0 sm:$0xff] }
   0x6   :  { %273 = vrot.lane.b32.xlu0 %v2102_v2, %s2032_s22  ;;  %238 = vrot.lane.b32.xlu1 %v2088_v0, %s2033_s25  ;;  %v2204_v20 = vrot.slane %v2185_v12, %v251_v10  ;;  %v2207_v21 = vrot.slane %v2190_v13, %v251_v10  ;;  %v2219_v30 = vrot.slane %v2185_v12, %v218_v22  ;;  %vm178_vm3 = vcmp.lt.s32.totalorder %v2171_v6, 127  ;;  %v2259_v49 = vld [vmem:[%s2766_s2 + $0x18] sm:$0xff]  ;;  %s2053_s11 = smov 104  }
   0x7   :  { %v2225_v35 = vrot.slane %v2190_v13, %v218_v22  ;;  %v2248_v46 = vrot.slane %v2185_v12, %v185_v36  ;;  %v2265_v54 = vrot.slane %v2254_v48, %v251_v10  ;;  %v2268_v55 = vrot.slane %v2259_v49, %v251_v10 }
   0x8   :  { %v2271_v56 = vrot.slane %v2190_v13, %v185_v36  ;;  %v2274_v59 = vrot.slane %v2254_v48, %v218_v22  ;;  %v152_v63 = vsub.s32 3, %v2173_v7  ;;  %v2287_v10 = vrot.slane %v2259_v49, %v218_v22 }
   0x9   :  { %vm145_vm4 = vcmp.lt.s32.totalorder %v2171_v6, 1  ;;  %vm112_vm5 = vcmp.lt.s32.totalorder %v2171_v6, 15  ;;  %vm79_vm6 = vcmp.lt.s32.totalorder %v2171_v6, 16  ;;  %vm46_vm7 = vcmp.lt.s32.totalorder %v2171_v6, 17 }
   0xa   :  { %240 = vrot.lane.b32.xlu0 %v2102_v2, %s2033_s25  ;;  %236 = vrot.lane.b32.xlu1 %v2093_v1, %s2033_s25  ;;  %vm1197_vm11 = vcmask 15360   ;;  %vm2047_vm12 = vmmov 0   ;;  %vm1278_vm13 = vcmask 3072   ;;  %vm1318_vm14 = vcmask 1043456  }
   0xb   :  { %vm1315_vm15 = vcmask 31744  }
   0xe   :  { %205 = vrot.lane.b32.xlu0 %v2088_v0, %s2034_s26  ;;  %207 = vrot.lane.b32.xlu1 %v2102_v2, %s2034_s26 }
  0x12   :  { %275 = vrot.lane.b32.xlu0 %v2119_v3, %s2032_s22  ;;  %203 = vrot.lane.b32.xlu1 %v2093_v1, %s2034_s26 }
  0x16   :  { %172 = vrot.lane.b32.xlu0 %v2088_v0, %s2035_s29  ;;  %174 = vrot.lane.b32.xlu1 %v2102_v2, %s2035_s29 }
  0x1a   :  { %242 = vrot.lane.b32.xlu0 %v2119_v3, %s2033_s25  ;;  %170 = vrot.lane.b32.xlu1 %v2093_v1, %s2035_s29 }
  0x1e   :  { %209 = vrot.lane.b32.xlu0 %v2119_v3, %s2034_s26  ;;  %137 = vrot.lane.b32.xlu1 %v2093_v1, %s2036_s30 }
  0x22   :  { %139 = vrot.lane.b32.xlu0 %v2088_v0, %s2036_s30  ;;  %176 = vrot.lane.b32.xlu1 %v2119_v3, %s2035_s29 }
  0x26   :  { %143 = vrot.lane.b32.xlu0 %v2119_v3, %s2036_s30  ;;  %104 = vrot.lane.b32.xlu1 %v2093_v1, %s2037_s6 }
  0x2a   :  { %106 = vrot.lane.b32.xlu0 %v2088_v0, %s2037_s6  ;;  %110 = vrot.lane.b32.xlu1 %v2119_v3, %s2037_s6 }
  0x2e   :  { %71 = vrot.lane.b32.xlu0 %v2093_v1, %s2038_s7  ;;  %73 = vrot.lane.b32.xlu1 %v2088_v0, %s2038_s7 }
  0x32   :  { %141 = vrot.lane.b32.xlu0 %v2102_v2, %s2036_s30  ;;  %77 = vrot.lane.b32.xlu1 %v2119_v3, %s2038_s7 }
  0x36   :  { %36 = vrot.lane.b32.xlu0 %v2093_v1, %s2040_s8  ;;  %38 = vrot.lane.b32.xlu1 %v2088_v0, %s2040_s8 }
  0x3a   :  { %108 = vrot.lane.b32.xlu0 %v2102_v2, %s2037_s6  ;;  %42 = vrot.lane.b32.xlu1 %v2119_v3, %s2040_s8 }
  0x3e   :  { %75 = vrot.lane.b32.xlu0 %v2102_v2, %s2038_s7  ;;  %40 = vrot.lane.b32.xlu1 %v2102_v2, %s2040_s8 }
  0x74   :  { %v272_v8 = vpop.permute.xlu0 %271  ;;  %v270_v9 = vpop.permute.xlu1 %269 }
  0x75   :  { %v280_v17 = vsel %vm277_vm0, %v270_v9, %v272_v8 }
  0x76   :  { %v298_v23 = vmul.f32 %v2195_v16, %v280_v17 }
  0x78   :  { %v274_v14 = vpop.permute.xlu0 %273  ;;  %v239_v15 = vpop.permute.xlu1 %238 }
  0x79   :  { %v279_v18 = vsel %vm277_vm0, %v272_v8, %v274_v14 }
  0x7a   :  { %v299_v19 = vmul.f32 %v2180_v11, %v279_v18 }
  0x7c   :  { %320 = vmatprep.subr.mxu0 %v299_v19  ;;  %v241_v24 = vpop.permute.xlu0 %240  ;;  %v237_v25 = vpop.permute.xlu1 %236  ;;  %v2295_v19 = vrot.slane %v2185_v12, %v152_v63 }
  0x7d   :  { %v246_v26 = vsel %vm244_vm1, %v239_v15, %v241_v24  ;;  %v247_v27 = vsel %vm244_vm1, %v237_v25, %v239_v15  ;;  %321 = vmatpush1.msra.mxu0 %v298_v23 }
  0x7e   :  { %v266_v28 = vmul.f32 %v2204_v20, %v246_v26  ;;  %v265_v29 = vmul.f32 %v2207_v21, %v247_v27 }
  0x80   :  { %v206_v31 = vpop.permute.xlu0 %205  ;;  %322 = vmatprep.subr.mxu0 %v266_v28  ;;  %v208_v32 = vpop.permute.xlu1 %207 }
  0x81   :  { %v213_v33 = vsel %vm211_vm2, %v206_v31, %v208_v32  ;;  %323 = vmatpush1.msra.mxu0 %v265_v29 }
  0x82   :  { %v233_v34 = vmul.f32 %v2219_v30, %v213_v33 }
  0x84   :  { %v276_v39 = vpop.permute.xlu0 %275  ;;  %324 = vmatprep.subr.mxu0 %v233_v34  ;;  %v204_v40 = vpop.permute.xlu1 %203  ;;  %v119_v34 = vsub.s32 2, %v2173_v7 }
  0x85   :  { %v278_v41 = vsel %vm277_vm0, %v274_v14, %v276_v39  ;;  %v214_v42 = vsel %vm211_vm2, %v204_v40, %v206_v31  ;;  %v281_v43 = vsel %vm277_vm0, %v276_v39, %v270_v9  ;;  %v2314_v31 = vrot.slane %v2190_v13, %v152_v63 }
  0x86   :  { %v232_v44 = vmul.f32 %v2225_v35, %v214_v42  ;;  %v301_v45 = vmul.f32 %v2231_v37, %v281_v43  ;;  %v300_v47 = vmul.f32 %v2236_v38, %v278_v41  ;;  %v2325_v42 = vrot.slane %v2185_v12, %v119_v34 }
  0x87   :  { %v2328_v43 = vrot.slane %v2190_v13, %v119_v34 }
  0x88   :  { %v173_v50 = vpop.permute.xlu0 %172  ;;  %325 = vmatpush1.msra.mxu0 %v232_v44  ;;  %391 = vmatprep.subr.mxu1 %v301_v45  ;;  %v175_v51 = vpop.permute.xlu1 %174  ;;  %v86_v44 = vsub.s32 1, %v2173_v7 }
  0x89   :  { %v180_v52 = vsel %vm178_vm3, %v173_v50, %v175_v51  ;;  %392 = vmatpush1.msra.mxu1 %v300_v47 }
  0x8a   :  { %v200_v53 = vmul.f32 %v2248_v46, %v180_v52 }
  0x8c   :  { %v243_v57 = vpop.permute.xlu0 %242  ;;  %326 = vmatprep.subr.mxu0 %v200_v53  ;;  %v171_v58 = vpop.permute.xlu1 %170 }
  0x8d   :  { %v245_v60 = vsel %vm244_vm1, %v241_v24, %v243_v57  ;;  %v248_v61 = vsel %vm244_vm1, %v243_v57, %v237_v25  ;;  %v181_v62 = vsel %vm178_vm3, %v171_v58, %v173_v50  ;;  %v2301_v24 = vrot.slane %v2254_v48, %v185_v36 }
  0x8e   :  { %v267_v5 = vmul.f32 %v2265_v54, %v245_v60  ;;  %v268_v8 = vmul.f32 %v2268_v55, %v248_v61  ;;  %v199_v9 = vmul.f32 %v2271_v56, %v181_v62  ;;  %v2304_v25 = vrot.slane %v2259_v49, %v185_v36 }
  0x8f   :  { %v2341_v57 = vrot.slane %v2185_v12, %v86_v44  ;;  %v2346_v60 = vrot.slane %v2254_v48, %v152_v63  ;;  %v2350_v62 = vrot.slane %v2259_v49, %v152_v63 }
  0x90   :  { %v210_v14 = vpop.permute.xlu0 %209  ;;  %327 = vmatpush1.msra.mxu0 %v199_v9  ;;  %393 = vmatprep.subr.mxu1 %v268_v8  ;;  %v138_v15 = vpop.permute.xlu1 %137  ;;  %v53_v8 = vsub.s32 0, %v2173_v7 }
  0x91   :  { %v212_v17 = vsel %vm211_vm2, %v208_v32, %v210_v14  ;;  %v215_v18 = vsel %vm211_vm2, %v210_v14, %v204_v40  ;;  %394 = vmatpush1.msra.mxu1 %v267_v5  ;;  %328 = vmatprep.subr.mxu0 %v2088_v0  ;;  %v2353_v5 = vrot.slane %v2190_v13, %v86_v44 }
  0x92   :  { %v234_v22 = vmul.f32 %v2274_v59, %v212_v17  ;;  %v235_v23 = vmul.f32 %v2287_v10, %v215_v18  ;;  %329 = vmatpush1.msra.mxu0 %v2093_v1 }
  0x94   :  { %v140_v26 = vpop.permute.xlu0 %139  ;;  %395 = vmatprep.subr.mxu1 %v235_v23  ;;  %v177_v27 = vpop.permute.xlu1 %176  ;;  %v2367_v23 = vrot.slane %v2185_v12, %v53_v8 }
  0x95   :  { %v148_v28 = vsel %vm145_vm4, %v138_v15, %v140_v26  ;;  %v179_v0 = vsel %vm178_vm3, %v175_v51, %v177_v27  ;;  %v182_v29 = vsel %vm178_vm3, %v177_v27, %v171_v58  ;;  %396 = vmatpush1.msra.mxu1 %v234_v22 }
  0x96   :  { %v167_v32 = vmul.f32 %v2295_v19, %v148_v28  ;;  %v201_v1 = vmul.f32 %v2301_v24, %v179_v0  ;;  %v202_v33 = vmul.f32 %v2304_v25, %v182_v29  ;;  %v2373_v29 = vrot.slane %v2254_v48, %v119_v34 }
  0x98   :  { %v144_v36 = vpop.permute.xlu0 %143  ;;  %330 = vmatprep.subr.mxu0 %v167_v32  ;;  %397 = vmatprep.subr.mxu1 %v202_v33  ;;  %v105_v39 = vpop.permute.xlu1 %104  ;;  %v2376_v32 = vrot.slane %v2259_v49, %v119_v34 }
  0x99   :  { %v149_v40 = vsel %vm145_vm4, %v144_v36, %v138_v15  ;;  %398 = vmatpush1.msra.mxu1 %v201_v1  ;;  %v2379_v1 = vrot.slane %v2190_v13, %v53_v8 }
  0x9a   :  { %v166_v41 = vmul.f32 %v2314_v31, %v149_v40  ;;  %399 = vmatprep.subr.mxu1 %v2119_v3 }
  0x9b   :  { %400 = vmatpush1.msra.mxu1 %v2102_v2 }
  0x9c   :  { %v107_v45 = vpop.permute.xlu0 %106  ;;  %331 = vmatpush1.msra.mxu0 %v166_v41  ;;  %v111_v47 = vpop.permute.xlu1 %110  ;;  %v2388_v41 = vrot.slane %v2254_v48, %v86_v44 }
  0x9d   :  { %v115_v50 = vsel %vm112_vm5, %v105_v39, %v107_v45  ;;  %v116_v51 = vsel %vm112_vm5, %v111_v47, %v105_v39 }
  0x9e   :  { %v134_v52 = vmul.f32 %v2325_v42, %v115_v50  ;;  %v133_v53 = vmul.f32 %v2328_v43, %v116_v51  ;;  %v2394_v51 = vrot.slane %v2259_v49, %v86_v44  ;;  %v2407_v44 = vrot.slane %v2254_v48, %v53_v8 }
  0xa0   :  { %v72_v3 = vpop.permute.xlu0 %71  ;;  %332 = vmatprep.subr.mxu0 %v134_v52  ;;  %v74_v2 = vpop.permute.xlu1 %73  ;;  %v2400_v52 = vrot.slane %v2259_v49, %v53_v8 }
  0xa1   :  { %v82_v58 = vsel %vm79_vm6, %v72_v3, %v74_v2  ;;  %333 = vmatpush1.msra.mxu0 %v133_v53 }
  0xa2   :  { %v101_v61 = vmul.f32 %v2341_v57, %v82_v58 }
  0xa4   :  { %v142_v9 = vpop.permute.xlu0 %141  ;;  %334 = vmatprep.subr.mxu0 %v101_v61  ;;  %v78_v14 = vpop.permute.xlu1 %77 }
  0xa5   :  { %v146_v15 = vsel %vm145_vm4, %v142_v9, %v144_v36  ;;  %v147_v17 = vsel %vm145_vm4, %v140_v26, %v142_v9  ;;  %v83_v18 = vsel %vm79_vm6, %v78_v14, %v72_v3 }
  0xa6   :  { %v168_v63 = vmul.f32 %v2346_v60, %v147_v17  ;;  %v169_v22 = vmul.f32 %v2350_v62, %v146_v15  ;;  %v100_v7 = vmul.f32 %v2353_v5, %v83_v18 }
  0xa8   :  { %v37_v27 = vpop.permute.xlu0 %36  ;;  %335 = vmatpush1.msra.mxu0 %v100_v7  ;;  %401 = vmatprep.subr.mxu1 %v169_v22  ;;  %v39_v28 = vpop.permute.xlu1 %38 }
  0xa9   :  { %v49_v26 = vsel %vm46_vm7, %v37_v27, %v39_v28  ;;  %402 = vmatpush1.msra.mxu1 %v168_v63 }
  0xaa   :  { %v68_v0 = vmul.f32 %v2367_v23, %v49_v26  ;;  %v2042_v26 = vmov 1  }
  0xab   :  { %1997 = vset.pattern.permute.xlu1 %v2042_v26 }
  0xac   :  { %v109_v12 = vpop.permute.xlu0 %108  ;;  %336 = vmatprep.subr.mxu0 %v68_v0  ;;  %v43_v33 = vpop.permute.xlu1 %42 }
  0xad   :  { %v113_v36 = vsel %vm112_vm5, %v109_v12, %v111_v47  ;;  %v114_v39 = vsel %vm112_vm5, %v107_v45, %v109_v12  ;;  %v50_v40 = vsel %vm46_vm7, %v43_v33, %v37_v27  ;;  %v32_v47 = vld [vmem:[%s2767_s1] sm:$0xff]  ;;  %v2041_v27 = vmov 0  }
  0xae   :  { %v135_v34 = vmul.f32 %v2373_v29, %v114_v39  ;;  %v136_v13 = vmul.f32 %v2376_v32, %v113_v36  ;;  %v67_v50 = vmul.f32 %v2379_v1, %v50_v40  ;;  %1996 = vset.pattern.permute.xlu0 %v2041_v27 }
  0xb0   :  { %v76_v45 = vpop.permute.xlu0 %75  ;;  %337 = vmatpush1.msra.mxu0 %v67_v50  ;;  %403 = vmatprep.subr.mxu1 %v136_v13  ;;  %v41_v53 = vpop.permute.xlu1 %40 }
  0xb1   :  { %v80_v3 = vsel %vm79_vm6, %v76_v45, %v78_v14  ;;  %v81_v58 = vsel %vm79_vm6, %v74_v2, %v76_v45  ;;  %v47_v61 = vsel %vm46_vm7, %v41_v53, %v43_v33  ;;  %404 = vmatpush1.msra.mxu1 %v135_v34  ;;  %v48_v49 = vsel %vm46_vm7, %v39_v28, %v41_v53  ;;  %v2425_v28 = vld [vmem:[%s2768_s4] sm:$0xff] }
  0xb2   :  { %v102_v9 = vmul.f32 %v2388_v41, %v81_v58  ;;  %v103_v15 = vmul.f32 %v2394_v51, %v80_v3  ;;  %1907 = vmatmul.mubr.msk.f32.vlgmr.msra.gmra.mxu0 %vm302_vm8, %v32_v47  ;;  %v70_v2 = vmul.f32 %v2400_v52, %v47_v61  ;;  %v69_v48 = vmul.f32 %v2407_v44, %v48_v49 }
  0xb3   :  { %691 = vmatprep.mubr.f32.mxu0 %v2039_v4 }
  0xb4   :  { %405 = vmatprep.subr.mxu1 %v103_v15 }
  0xb5   :  { %406 = vmatpush1.msra.mxu1 %v102_v9 }
  0xb6   :  { %407 = vmatprep.subr.mxu1 %v70_v2 }
  0xb7   :  { %408 = vmatpush1.msra.mxu1 %v69_v48 }
  0xb8   :  { %1908 = vmatmul.mubr.msk.f32.vlgmr.msra.gmra.mxu1 %vm302_vm8, %v32_v47 }
  0xb9   :  { %762 = vmatprep.mubr.f32.mxu1 %v2039_v4 }
 0x172   :  { %v372_v8 = vpop.f32.mrf.mxu0 }
 0x174   :  { %v374_v14 = vpop.f32.mrf.mxu0 }
 0x175   :  { %v448_v17 = vadd.f32 %v374_v14, %v372_v8 }
 0x178   :  { %v443_v18 = vpop.f32.mrf.mxu1 }
 0x179   :  { %v449_v63 = vadd.f32 %v448_v17, %v443_v18 }
 0x17a   :  { %v445_v22 = vpop.f32.mrf.mxu1 }
 0x17b   :  { %v450_v7 = vadd.f32 %v449_v63, %v445_v22 }
 0x17d   :  { %451 = vadd.xlane.f32.xlu0 %v450_v7 }
 0x193   :  { %477 = vperm.xlu0 %1996, %v2425_v28  }
 0x206   :  { %v452_v0 = vpop.xlane.xlu0 %451 }
 0x207   :  { %v454_v12 = vmul.f32 0.001953125, %v452_v0 }
 0x209   :  { %v455_v33 = vsub.f32 %v372_v8, %v454_v12  ;;  %v456_v36 = vsub.f32 %v374_v14, %v454_v12  ;;  %v457_v39 = vsub.f32 %v443_v18, %v454_v12  ;;  %v458_v40 = vsub.f32 %v445_v22, %v454_v12 }
 0x20b   :  { %v459_v34 = vmul.f32 %v455_v33, %v455_v33  ;;  %v460_v13 = vmul.f32 %v456_v36, %v456_v36  ;;  %v461_v50 = vmul.f32 %v457_v39, %v457_v39  ;;  %v462_v45 = vmul.f32 %v458_v40, %v458_v40 }
 0x20d   :  { %v463_v47 = vadd.f32 %v460_v13, %v459_v34 }
 0x20e   :  { %v478_v49 = vpop.permute.xlu0 %477 }
 0x20f   :  { %v464_v53 = vadd.f32 %v463_v47, %v461_v50 }
 0x211   :  { %v465_v3 = vadd.f32 %v464_v53, %v462_v45 }
 0x213   :  { %466 = vadd.xlane.f32.xlu1 %v465_v3 }
 0x224   :  { %485 = vperm.xlu1 %1997, %v2425_v28  }
 0x29c   :  { %v467_v58 = vpop.xlane.xlu1 %466 }
 0x29d   :  { %v468_v61 = vmul.f32 0.001953125, %v467_v58 }
 0x29f   :  { %v469_v9 = vadd.f32 1e-05, %v468_v61 }
 0x2a0   :  { %v486_v14 = vpop.permute.xlu1 %485 }
 0x2a1   :  { %2004 = vrsqrt.f32 %v469_v9 }
 0x2ae   :  { %v2005_v15 = vpop.eup %2004 }
 0x2af   :  { %v472_v2 = vmul.f32 %v2005_v15, %v456_v36  ;;  %v473_v48 = vmul.f32 %v2005_v15, %v457_v39  ;;  %v474_v8 = vmul.f32 %v2005_v15, %v458_v40  ;;  %v471_v17 = vmul.f32 %v2005_v15, %v455_v33 }
 0x2b1   :  { %v481_v18 = vmul.f32 %v478_v49, %v472_v2  ;;  %v482_v63 = vmul.f32 %v478_v49, %v473_v48  ;;  %v483_v22 = vmul.f32 %v478_v49, %v474_v8  ;;  %v480_v26 = vmul.f32 %v478_v49, %v471_v17 }
 0x2b3   :  { %v489_v7 = vadd.f32 %v486_v14, %v481_v18  ;;  %v490_v0 = vadd.f32 %v486_v14, %v482_v63  ;;  %v491_v12 = vadd.f32 %v486_v14, %v483_v22  ;;  %v488_v36 = vadd.f32 %v486_v14, %v480_v26 }
 0x2b5   :  { %v2429_v34 = vmax.f32 %v489_v7, 0.0  ;;  %v2435_v39 = vmax.f32 %v490_v0, 0.0  ;;  %v2437_v40 = vmax.f32 %v491_v12, 0.0  ;;  %v2443_v33 = vmax.f32 %v488_v36, 0.0 }
 0x2b7   :  { %578 = vrot.lane.b32.xlu0 %v2429_v34, %s2034_s26  ;;  %610 = vrot.lane.b32.xlu1 %v2429_v34, %s2032_s22 }
 0x2bb   :  { %614 = vrot.lane.b32.xlu0 %v2437_v40, %s2032_s22  ;;  %612 = vrot.lane.b32.xlu1 %v2435_v39, %s2032_s22 }
 0x2bf   :  { %562 = vrot.lane.b32.xlu0 %v2429_v34, %s2035_s29  ;;  %608 = vrot.lane.b32.xlu1 %v2443_v33, %s2032_s22 }
 0x2c3   :  { %598 = vrot.lane.b32.xlu0 %v2437_v40, %s2033_s25  ;;  %594 = vrot.lane.b32.xlu1 %v2429_v34, %s2033_s25 }
 0x2c7   :  { %582 = vrot.lane.b32.xlu0 %v2437_v40, %s2034_s26  ;;  %596 = vrot.lane.b32.xlu1 %v2435_v39, %s2033_s25 }
 0x2cb   :  { %546 = vrot.lane.b32.xlu0 %v2429_v34, %s2036_s30  ;;  %592 = vrot.lane.b32.xlu1 %v2443_v33, %s2033_s25 }
 0x2cf   :  { %550 = vrot.lane.b32.xlu0 %v2437_v40, %s2036_s30  ;;  %580 = vrot.lane.b32.xlu1 %v2435_v39, %s2034_s26 }
 0x2d3   :  { %530 = vrot.lane.b32.xlu0 %v2429_v34, %s2037_s6  ;;  %576 = vrot.lane.b32.xlu1 %v2443_v33, %s2034_s26 }
 0x2d7   :  { %512 = vrot.lane.b32.xlu0 %v2443_v33, %s2038_s7  ;;  %564 = vrot.lane.b32.xlu1 %v2435_v39, %s2035_s29 }
 0x2db   :  { %548 = vrot.lane.b32.xlu0 %v2435_v39, %s2036_s30  ;;  %560 = vrot.lane.b32.xlu1 %v2443_v33, %s2035_s29 }
 0x2df   :  { %496 = vrot.lane.b32.xlu0 %v2443_v33, %s2040_s8  ;;  %544 = vrot.lane.b32.xlu1 %v2443_v33, %s2036_s30  ;;  %s2049_s30 = smov 123  }
 0x2e3   :  { %532 = vrot.lane.b32.xlu0 %v2435_v39, %s2037_s6  ;;  %566 = vrot.lane.b32.xlu1 %v2437_v40, %s2035_s29  ;;  %s2048_s29 = smov 124  }
 0x2e7   :  { %516 = vrot.lane.b32.xlu0 %v2435_v39, %s2038_s7  ;;  %528 = vrot.lane.b32.xlu1 %v2443_v33, %s2037_s6 }
 0x2eb   :  { %534 = vrot.lane.b32.xlu1 %v2437_v40, %s2037_s6  ;;  %s2050_s6 = smov 122  }
 0x2ef   :  { %514 = vrot.lane.b32.xlu1 %v2429_v34, %s2038_s7 }
 0x2f3   :  { %518 = vrot.lane.b32.xlu1 %v2437_v40, %s2038_s7  ;;  %s2051_s7 = smov 96  }
 0x2f7   :  { %498 = vrot.lane.b32.xlu1 %v2429_v34, %s2040_s8 }
 0x2fb   :  { %502 = vrot.lane.b32.xlu1 %v2437_v40, %s2040_s8 }
 0x2ff   :  { %500 = vrot.lane.b32.xlu1 %v2435_v39, %s2040_s8  ;;  %s2052_s8 = smov 121  }
 0x329   :  { %v579_v13 = vpop.permute.xlu0 %578  ;;  %v611_v50 = vpop.permute.xlu1 %610 }
 0x32d   :  { %v615_v47 = vpop.permute.xlu0 %614  ;;  %v613_v45 = vpop.permute.xlu1 %612 }
 0x32e   :  { %v617_v53 = vsel %vm277_vm0, %v611_v50, %v613_v45  ;;  %v616_v58 = vsel %vm277_vm0, %v613_v45, %v615_v47 }
 0x32f   :  { %v621_v3 = vmul.f32 %v2180_v11, %v617_v53  ;;  %v622_v8 = vmul.f32 %v2236_v38, %v616_v58 }
 0x331   :  { %v563_v61 = vpop.permute.xlu0 %562  ;;  %641 = vmatprep.subr.mxu0 %v621_v3  ;;  %v609_v9 = vpop.permute.xlu1 %608 }
 0x332   :  { %v618_v15 = vsel %vm277_vm0, %v609_v9, %v611_v50  ;;  %v619_v49 = vsel %vm277_vm0, %v615_v47, %v609_v9 }
 0x333   :  { %v620_v2 = vmul.f32 %v2195_v16, %v618_v15  ;;  %v623_v48 = vmul.f32 %v2231_v37, %v619_v49 }
 0x335   :  { %v599_v14 = vpop.permute.xlu0 %598  ;;  %642 = vmatpush1.msra.mxu0 %v620_v2  ;;  %712 = vmatprep.subr.mxu1 %v623_v48  ;;  %v595_v11 = vpop.permute.xlu1 %594 }
 0x336   :  { %713 = vmatpush1.msra.mxu1 %v622_v8 }
 0x339   :  { %v583_v17 = vpop.permute.xlu0 %582  ;;  %v597_v18 = vpop.permute.xlu1 %596 }
 0x33a   :  { %v601_v63 = vsel %vm244_vm1, %v595_v11, %v597_v18  ;;  %v600_v7 = vsel %vm244_vm1, %v597_v18, %v599_v14 }
 0x33b   :  { %v605_v22 = vmul.f32 %v601_v63, %v2204_v20  ;;  %v606_v36 = vmul.f32 %v600_v7, %v2265_v54 }
 0x33d   :  { %v547_v16 = vpop.permute.xlu0 %546  ;;  %643 = vmatprep.subr.mxu0 %v605_v22  ;;  %v593_v37 = vpop.permute.xlu1 %592 }
 0x33e   :  { %v602_v38 = vsel %vm244_vm1, %v593_v37, %v595_v11  ;;  %v603_v26 = vsel %vm244_vm1, %v599_v14, %v593_v37 }
 0x33f   :  { %v604_v0 = vmul.f32 %v602_v38, %v2207_v21  ;;  %v607_v12 = vmul.f32 %v603_v26, %v2268_v55 }
 0x341   :  { %v551_v50 = vpop.permute.xlu0 %550  ;;  %644 = vmatpush1.msra.mxu0 %v604_v0  ;;  %714 = vmatprep.subr.mxu1 %v607_v12  ;;  %v581_v20 = vpop.permute.xlu1 %580 }
 0x342   :  { %v585_v47 = vsel %vm211_vm2, %v579_v13, %v581_v20  ;;  %715 = vmatpush1.msra.mxu1 %v606_v36  ;;  %v584_v53 = vsel %vm211_vm2, %v581_v20, %v583_v17 }
 0x343   :  { %v589_v45 = vmul.f32 %v585_v47, %v2219_v30  ;;  %v590_v15 = vmul.f32 %v584_v53, %v2274_v59 }
 0x345   :  { %v531_v3 = vpop.permute.xlu0 %530  ;;  %645 = vmatprep.subr.mxu0 %v589_v45  ;;  %v577_v21 = vpop.permute.xlu1 %576 }
 0x346   :  { %v586_v55 = vsel %vm211_vm2, %v577_v21, %v579_v13  ;;  %v587_v54 = vsel %vm211_vm2, %v583_v17, %v577_v21 }
 0x347   :  { %v588_v58 = vmul.f32 %v586_v55, %v2225_v35  ;;  %v591_v9 = vmul.f32 %v587_v54, %v2287_v10 }
 0x349   :  { %v513_v49 = vpop.permute.xlu0 %512  ;;  %646 = vmatpush1.msra.mxu0 %v588_v58  ;;  %716 = vmatprep.subr.mxu1 %v591_v9  ;;  %v565_v30 = vpop.permute.xlu1 %564 }
 0x34a   :  { %v569_v2 = vsel %vm178_vm3, %v563_v61, %v565_v30  ;;  %717 = vmatpush1.msra.mxu1 %v590_v15 }
 0x34b   :  { %v573_v48 = vmul.f32 %v569_v2, %v2248_v46 }
 0x34d   :  { %647 = vmatprep.subr.mxu0 %v573_v48  ;;  %v561_v13 = vpop.permute.xlu1 %560  ;;  %v549_v8 = vpop.permute.xlu0 %548 }
 0x34e   :  { %v570_v35 = vsel %vm178_vm3, %v561_v13, %v563_v61 }
 0x34f   :  { %v572_v10 = vmul.f32 %v570_v35, %v2271_v56 }
 0x351   :  { %648 = vmatpush1.msra.mxu0 %v572_v10  ;;  %v545_v59 = vpop.permute.xlu1 %544  ;;  %v497_v18 = vpop.permute.xlu0 %496 }
 0x352   :  { %v554_v14 = vsel %vm145_vm4, %v545_v59, %v547_v16  ;;  %v555_v11 = vsel %vm145_vm4, %v551_v50, %v545_v59  ;;  %649 = vmatprep.subr.mxu0 %v2429_v34 }
 0x353   :  { %v556_v46 = vmul.f32 %v555_v11, %v2314_v31  ;;  %v557_v17 = vmul.f32 %v554_v14, %v2295_v19  ;;  %650 = vmatpush1.msra.mxu0 %v2443_v33  ;;  %v552_v31 = vsel %vm145_vm4, %v549_v8, %v551_v50  ;;  %v553_v19 = vsel %vm145_vm4, %v547_v16, %v549_v8 }
 0x354   :  { %v559_v38 = vmul.f32 %v552_v31, %v2350_v62  ;;  %v2043_v8 = vmov 2  }
 0x355   :  { %651 = vmatprep.subr.mxu0 %v557_v17  ;;  %v567_v61 = vpop.permute.xlu1 %566  ;;  %v533_v7 = vpop.permute.xlu0 %532  ;;  %1998 = vset.pattern.permute.xlu0 %v2043_v8 }
 0x356   :  { %v568_v56 = vsel %vm178_vm3, %v565_v30, %v567_v61  ;;  %v571_v63 = vsel %vm178_vm3, %v567_v61, %v561_v13  ;;  %652 = vmatpush1.msra.mxu0 %v556_v46 }
 0x357   :  { %v574_v22 = vmul.f32 %v568_v56, %v2301_v24  ;;  %v575_v34 = vmul.f32 %v571_v63, %v2304_v25  ;;  %v558_v24 = vmul.f32 %v553_v19, %v2346_v60  ;;  %v537_v25 = vsel %vm112_vm5, %v531_v3, %v533_v7 }
 0x358   :  { %v542_v60 = vmul.f32 %v537_v25, %v2373_v29 }
 0x359   :  { %718 = vmatprep.subr.mxu1 %v575_v34  ;;  %v529_v33 = vpop.permute.xlu1 %528  ;;  %v517_v50 = vpop.permute.xlu0 %516 }
 0x35a   :  { %v538_v37 = vsel %vm112_vm5, %v529_v33, %v531_v3  ;;  %719 = vmatpush1.msra.mxu1 %v574_v22 }
 0x35b   :  { %v541_v26 = vmul.f32 %v538_v37, %v2325_v42  ;;  %720 = vmatprep.subr.mxu1 %v2437_v40 }
 0x35c   :  { %721 = vmatpush1.msra.mxu1 %v2435_v39 }
 0x35d   :  { %653 = vmatprep.subr.mxu0 %v541_v26  ;;  %722 = vmatprep.subr.mxu1 %v559_v38  ;;  %v535_v16 = vpop.permute.xlu1 %534 }
 0x35e   :  { %v536_v0 = vsel %vm112_vm5, %v533_v7, %v535_v16  ;;  %v539_v62 = vsel %vm112_vm5, %v535_v16, %v529_v33  ;;  %723 = vmatpush1.msra.mxu1 %v558_v24 }
 0x35f   :  { %v540_v42 = vmul.f32 %v539_v62, %v2328_v43  ;;  %v543_v40 = vmul.f32 %v536_v0, %v2376_v32 }
 0x361   :  { %654 = vmatpush1.msra.mxu0 %v540_v42  ;;  %724 = vmatprep.subr.mxu1 %v543_v40  ;;  %v515_v39 = vpop.permute.xlu1 %514 }
 0x362   :  { %v522_v12 = vsel %vm79_vm6, %v513_v49, %v515_v39  ;;  %725 = vmatpush1.msra.mxu1 %v542_v60  ;;  %v521_v20 = vsel %vm79_vm6, %v515_v39, %v517_v50 }
 0x363   :  { %v525_v36 = vmul.f32 %v522_v12, %v2341_v57  ;;  %v526_v53 = vmul.f32 %v521_v20, %v2388_v41 }
 0x365   :  { %655 = vmatprep.subr.mxu0 %v525_v36  ;;  %v519_v47 = vpop.permute.xlu1 %518  ;;  %v2619_v36 = vld [vmem:[%s2769_s3] sm:$0xff]  ;;  %s2045_s3 = smov 88  }
 0x366   :  { %v520_v43 = vsel %vm79_vm6, %v517_v50, %v519_v47  ;;  %v523_v29 = vsel %vm79_vm6, %v519_v47, %v513_v49 }
 0x367   :  { %v524_v32 = vmul.f32 %v523_v29, %v2353_v5  ;;  %v527_v45 = vmul.f32 %v520_v43, %v2394_v51  ;;  %v33_v5 = vld [vmem:[%s2767_s1 + $0x8] sm:$0xff] }
 0x369   :  { %656 = vmatpush1.msra.mxu0 %v524_v32  ;;  %726 = vmatprep.subr.mxu1 %v527_v45  ;;  %v499_v57 = vpop.permute.xlu1 %498 }
 0x36a   :  { %v506_v3 = vsel %vm46_vm7, %v497_v18, %v499_v57  ;;  %727 = vmatpush1.msra.mxu1 %v526_v53 }
 0x36b   :  { %v509_v21 = vmul.f32 %v506_v3, %v2367_v23 }
 0x36d   :  { %657 = vmatprep.subr.mxu0 %v509_v21  ;;  %v503_v55 = vpop.permute.xlu1 %502 }
 0x36e   :  { %v507_v54 = vsel %vm46_vm7, %v503_v55, %v497_v18 }
 0x36f   :  { %v508_v41 = vmul.f32 %v507_v54, %v2379_v1 }
 0x371   :  { %658 = vmatpush1.msra.mxu0 %v508_v41  ;;  %v501_v51 = vpop.permute.xlu1 %500 }
 0x372   :  { %v504_v58 = vsel %vm46_vm7, %v501_v51, %v503_v55  ;;  %v505_v9 = vsel %vm46_vm7, %v499_v57, %v501_v51  ;;  %1909 = vmatmul.mubr.msk.f32.vlgmr.msra.gmra.mxu0 %vm302_vm8, %v33_v5 }
 0x373   :  { %v510_v23 = vmul.f32 %v505_v9, %v2407_v44  ;;  %v511_v15 = vmul.f32 %v504_v58, %v2400_v52  ;;  %879 = vmatprep.mubr.f32.mxu0 %v2039_v4  ;;  %v2044_v44 = vmov 3  }
 0x374   :  { %1999 = vset.pattern.permute.xlu1 %v2044_v44 }
 0x375   :  { %728 = vmatprep.subr.mxu1 %v511_v15 }
 0x376   :  { %729 = vmatpush1.msra.mxu1 %v510_v23 }
 0x377   :  { %1910 = vmatmul.mubr.msk.f32.vlgmr.msra.gmra.mxu1 %vm302_vm8, %v33_v5 }
 0x378   :  { %950 = vmatprep.mubr.f32.mxu1 %v2039_v4 }
 0x432   :  { %v693_v1 = vpop.f32.mrf.mxu0 }
 0x434   :  { %v695_v49 = vpop.f32.mrf.mxu0 }
 0x435   :  { %v769_v30 = vadd.f32 %v695_v49, %v693_v1 }
 0x437   :  { %v764_v2 = vpop.f32.mrf.mxu1 }
 0x438   :  { %v770_v6 = vadd.f32 %v769_v30, %v764_v2 }
 0x439   :  { %v766_v48 = vpop.f32.mrf.mxu1 }
 0x43a   :  { %v771_v13 = vadd.f32 %v770_v6, %v766_v48 }
 0x43c   :  { %772 = vadd.xlane.f32.xlu0 %v771_v13 }
 0x452   :  { %796 = vperm.xlu0 %1998, %v2425_v28  }
 0x456   :  { %2003 = vset.pattern.permute.xlu0 %v2041_v27 }
 0x4c5   :  { %v773_v52 = vpop.xlane.xlu0 %772 }
 0x4c6   :  { %v774_v35 = vmul.f32 0.001953125, %v773_v52 }
 0x4c8   :  { %v775_v10 = vsub.f32 %v693_v1, %v774_v35  ;;  %v776_v59 = vsub.f32 %v695_v49, %v774_v35  ;;  %v777_v14 = vsub.f32 %v764_v2, %v774_v35  ;;  %v778_v11 = vsub.f32 %v766_v48, %v774_v35 }
 0x4ca   :  { %v779_v46 = vmul.f32 %v775_v10, %v775_v10  ;;  %v780_v17 = vmul.f32 %v776_v59, %v776_v59  ;;  %v781_v18 = vmul.f32 %v777_v14, %v777_v14  ;;  %v782_v56 = vmul.f32 %v778_v11, %v778_v11 }
 0x4cc   :  { %v783_v61 = vadd.f32 %v780_v17, %v779_v46 }
 0x4cd   :  { %v797_v7 = vpop.permute.xlu0 %796 }
 0x4ce   :  { %v784_v63 = vadd.f32 %v783_v61, %v781_v18 }
 0x4d0   :  { %v785_v22 = vadd.f32 %v784_v63, %v782_v56 }
 0x4d2   :  { %786 = vadd.xlane.f32.xlu1 %v785_v22 }
 0x4e3   :  { %804 = vperm.xlu1 %1999, %v2425_v28  }
 0x4e7   :  { %2000 = vset.pattern.permute.xlu1 %v2041_v27 }
 0x55b   :  { %v787_v34 = vpop.xlane.xlu1 %786 }
 0x55c   :  { %v788_v31 = vmul.f32 0.001953125, %v787_v34 }
 0x55e   :  { %v789_v19 = vadd.f32 1e-05, %v788_v31 }
 0x55f   :  { %v805_v25 = vpop.permute.xlu1 %804 }
 0x560   :  { %2006 = vrsqrt.f32 %v789_v19 }
 0x56d   :  { %v2007_v33 = vpop.eup %2006 }
 0x56e   :  { %v791_v37 = vmul.f32 %v2007_v33, %v775_v10  ;;  %v792_v38 = vmul.f32 %v2007_v33, %v776_v59  ;;  %v793_v26 = vmul.f32 %v2007_v33, %v777_v14  ;;  %v794_v24 = vmul.f32 %v2007_v33, %v778_v11 }
 0x570   :  { %v799_v16 = vmul.f32 %v797_v7, %v791_v37  ;;  %v800_v0 = vmul.f32 %v797_v7, %v792_v38  ;;  %v801_v62 = vmul.f32 %v797_v7, %v793_v26  ;;  %v802_v42 = vmul.f32 %v797_v7, %v794_v24 }
 0x572   :  { %v807_v40 = vadd.f32 %v805_v25, %v799_v16  ;;  %v2612_v60 = vadd.f32 %v805_v25, %v801_v62  ;;  %v808_v39 = vadd.f32 %v805_v25, %v800_v0  ;;  %v2614_v12 = vadd.f32 %v805_v25, %v802_v42 }
 0x574   :  { %845 = vmatprep.subr.mxu0 %v808_v39  ;;  %916 = vmatprep.subr.mxu1 %v2614_v12 }
 0x575   :  { %846 = vmatpush1.msra.mxu0 %v807_v40  ;;  %917 = vmatpush1.msra.mxu1 %v2612_v60 }
 0x576   :  { %1911 = vmatmul.mubr.msk.f32.vlgmr.msra.gmra.mxu0 %vm811_vm9, %v2619_v36  ;;  %991 = vmatprep.subr.mxu0 %v808_v39 }
 0x577   :  { %1062 = vmatprep.subr.mxu1 %v2614_v12  ;;  %1912 = vmatmul.mubr.msk.f32.vlgmr.msra.gmra.mxu1 %vm811_vm9, %v2619_v36 }
 0x578   :  { %992 = vmatpush1.msra.mxu0 %v807_v40  ;;  %1063 = vmatpush1.msra.mxu1 %v2612_v60 }
 0x579   :  { %1025 = vmatprep.mubr.f32.mxu0 %v2039_v4  ;;  %1096 = vmatprep.mubr.f32.mxu1 %v2039_v4 }
 0x57a   :  { %1935 = vmatprep.subr.mxu1 %v2039_v4 }
 0x636   :  { %v881_v50 = vpop.f32.mrf.mxu0 }
 0x637   :  { %v1104_v47 = vsel %vm1103_vm10, %v881_v50, -inf  ;;  %v952_v58 = vpop.f32.mrf.mxu1 }
 0x638   :  { %v883_v20 = vpop.f32.mrf.mxu0  ;;  %v1520_v23 = vsel %vm1103_vm10, %v952_v58, -inf }
 0x639   :  { %v1105_v43 = vsel %vm1103_vm10, %v883_v20, -inf  ;;  %v954_v9 = vpop.f32.mrf.mxu1 }
 0x63a   :  { %v1106_v29 = vmax.f32 %v1104_v47, %v1105_v43  ;;  %v1521_v15 = vsel %vm1103_vm10, %v954_v9, -inf }
 0x63b   :  { %v1522_v1 = vmax.f32 %v1520_v23, %v1521_v15 }
 0x63c   :  { %1107 = vmax.xlane.f32.xlu1 %v1106_v29 }
 0x64d   :  { %957 = vrot.lane.b32.xlu1 %v2619_v36, %s2033_s25  ;;  %s2046_s25 = smov 120  }
 0x6c5   :  { %v1108_v32 = vpop.xlane.xlu1 %1107 }
 0x6c6   :  { %v1109_v45 = vsub.f32 %v881_v50, %v1108_v32  ;;  %v1110_v53 = vsub.f32 %v883_v20, %v1108_v32 }
 0x6c8   :  { %v1111_v57 = vmul.f32 1.442695, %v1109_v45  ;;  %v1113_v3 = vmul.f32 1.442695, %v1110_v53 }
 0x6c9   :  { %v958_v21 = vpop.permute.xlu1 %957 }
 0x6ca   :  { %2008 = vpow2.f32 %v1111_v57  ;;  %1913 = vmatmul.mubr.msk.f32.vlgmr.msra.gmra.mxu0 %vm811_vm9, %v958_v21  ;;  %1914 = vmatmul.mubr.msk.f32.vlgmr.msra.gmra.mxu1 %vm811_vm9, %v958_v21 }
 0x6cb   :  { %2010 = vpow2.f32 %v1113_v3  ;;  %1187 = vmatprep.mubr.f32.mxu0 %v808_v39  ;;  %1937 = vmatprep.mubr.msk.f32.mxu1 %vm2047_vm12, %v2039_v4 }
 0x6d7   :  { %v2009_v55 = vpop.eup %2008 }
 0x6d8   :  { %v2011_v54 = vpop.eup %2010  ;;  %v1115_v5 = vsel %vm1103_vm10, %v2009_v55, 0.0 }
 0x6d9   :  { %v1116_v41 = vsel %vm1103_vm10, %v2011_v54, 0.0 }
 0x6da   :  { %v1117_v51 = vadd.f32 %v1116_v41, %v1115_v5 }
 0x6dc   :  { %1118 = vadd.xlane.f32.xlu0 %v1117_v51 }
 0x6f2   :  { %1193 = vrot.lane.b32.xlu0 %v2619_v36, %s2045_s3 }
 0x6f6   :  { %1201 = vrot.lane.b32.xlu0 %v2619_v36, %s2046_s25 }
 0x715   :  { %1523 = vmax.xlane.f32.xlu0 %v1522_v1 }
 0x72b   :  { %1301 = vrot.lane.b32.xlu0 %v2425_v28, %s2049_s30 }
 0x72f   :  { %1305 = vrot.lane.b32.xlu0 %v2425_v28, %s2050_s6 }
 0x733   :  { %1310 = vrot.lane.b32.xlu0 %v2619_v36, %s2051_s7 }
 0x765   :  { %v1119_v49 = vpop.xlane.xlu0 %1118 }
 0x766   :  { %2012 = vrcp.f32 %v1119_v49 }
 0x769   :  { %v2649_v8 = vpop.permute.xlu0 %1193 }
 0x76d   :  { %v2657_v59 = vpop.permute.xlu0 %1201 }
 0x773   :  { %v2013_v30 = vpop.eup %2012 }
 0x774   :  { %v1122_v2 = vmul.f32 %v2013_v30, %v2011_v54  ;;  %v1121_v6 = vmul.f32 %v2013_v30, %v2009_v55 }
 0x776   :  { %1153 = vmatprep.subr.mxu0 %v1122_v2 }
 0x777   :  { %1154 = vmatpush1.xpose.msra.mxu0 %v1121_v6 }
 0x778   :  { %1940 = vmatprep.subr.mxu0 %v2039_v4 }
 0x77a   :  { %1188 = vmatmul.mubr.f32.vlgmr.msra.gmra.mxu0 %v807_v40 }
 0x77b   :  { %1942 = vmatprep.mubr.msk.f32.mxu0 %vm2047_vm12, %v2039_v4 }
 0x78a   :  { %v2645_v48 = vpop.f32.mrf.mxu0  ;;  %v2675_v19 = vpop.f32.mrf.mxu1 }
 0x78c   :  { %v2647_v13 = vpop.f32.mrf.mxu0  ;;  %v2677_v33 = vpop.f32.mrf.mxu1 }
 0x79e   :  { %v1524_v14 = vpop.xlane.xlu0 %1523 }
 0x79f   :  { %v1525_v11 = vsub.f32 %v952_v58, %v1524_v14  ;;  %v1526_v46 = vsub.f32 %v954_v9, %v1524_v14 }
 0x7a1   :  { %v1527_v17 = vmul.f32 1.442695, %v1525_v11  ;;  %v1529_v18 = vmul.f32 1.442695, %v1526_v46  ;;  %v2054_v46 = vmov 8  }
 0x7a2   :  { %v2684_v55 = vpop.permute.xlu0 %1301 }
 0x7a3   :  { %2014 = vpow2.f32 %v1527_v17 }
 0x7a4   :  { %2016 = vpow2.f32 %v1529_v18 }
 0x7a6   :  { %v2686_v41 = vpop.permute.xlu0 %1305 }
 0x7aa   :  { %v2690_v15 = vpop.permute.xlu0 %1310 }
 0x7b0   :  { %v2660_v61 = vpop.eup %2014 }
 0x7b1   :  { %v2017_v56 = vpop.eup %2016  ;;  %v1531_v63 = vsel %vm1103_vm10, %v2660_v61, 0.0 }
 0x7b2   :  { %v1532_v22 = vsel %vm1103_vm10, %v2017_v56, 0.0 }
 0x7b3   :  { %v1533_v34 = vadd.f32 %v1532_v22, %v1531_v63 }
 0x83a   :  { %v1189_v44 = vpop.f32.mrf.mxu0 }
 0x83b   :  { %v1196_v52 = vmul.f32 %v2649_v8, %v1189_v44 }
 0x83c   :  { %v1191_v35 = vpop.f32.mrf.mxu0 }
 0x83d   :  { %v1198_v10 = vsel %vm1197_vm11, %v1196_v52, 0.0 }
 0x83e   :  { %1199 = vadd.xlane.f32.xlu1 %v1198_v10 }
 0x84f   :  { %1203 = vrot.lane.b32.xlu1 %v2425_v28, %s2048_s29 }
 0x873   :  { %1534 = vadd.xlane.f32.xlu1 %v1533_v34 }
 0x884   :  { %1312 = vrot.lane.b32.xlu1 %v2425_v28, %s2052_s8 }
 0x888   :  { %1392 = vrot.lane.b32.xlu1 %v2619_v36, %s2053_s11 }
 0x8c7   :  { %v1200_v31 = vpop.xlane.xlu1 %1199 }
 0x8c8   :  { %1936 = vmatpush3.msra.mxu1 %v1200_v31 }
 0x8c9   :  { %1938 = vmatmul.mubr.msk.f32.vlgmr.msra.gmra.mxu1 %vm811_vm9, %v2657_v59  ;;  %1945 = vmatprep.subr.mxu1 %v2039_v4 }
 0x8ca   :  { %1947 = vmatprep.mubr.msk.f32.mxu1 %vm2047_vm12, %v2039_v4 }
 0x8cb   :  { %v2679_v7 = vpop.permute.xlu1 %1203 }
 0x8fc   :  { %v1535_v21 = vpop.xlane.xlu1 %1534 }
 0x900   :  { %v2701_v30 = vpop.permute.xlu1 %1312 }
 0x904   :  { %v2704_v44 = vpop.permute.xlu1 %1392 }
 0x989   :  { %v1274_v37 = vpop.f32.mrf.mxu1 }
 0x98a   :  { %v1275_v38 = vadd.f32 %v1274_v37, %v2679_v7 }
 0x98b   :  { %v1939_v26 = vpop.f32.mrf.mxu1 }
 0x98c   :  { %v1279_v24 = vsel %vm1278_vm13, %v1275_v38, 0.0 }
 0x98d   :  { %v1280_v25 = vrot.slane %v1279_v24, 4 }
 0x98f   :  { %v1281_v16 = vadd.f32 %v1280_v25, %v1279_v24 }
 0x991   :  { %v1282_v0 = vrot.slane %v1281_v16, 2 }
 0x993   :  { %v1283_v62 = vadd.f32 %v1282_v0, %v1281_v16 }
 0x995   :  { %v1284_v42 = vrot.slane %v1283_v62, 1 }
 0x997   :  { %v1285_v40 = vadd.f32 %v1284_v42, %v1283_v62 }
 0x999   :  { %v1287_v39 = vmul.f32 0.25, %v1285_v40 }
 0x99b   :  { %v1288_v36 = vsub.f32 %v1275_v38, %v1287_v39 }
 0x99d   :  { %v1289_v50 = vmul.f32 %v1288_v36, %v1288_v36 }
 0x99f   :  { %v1290_v20 = vsel %vm1278_vm13, %v1289_v50, 0.0 }
 0x9a0   :  { %v1291_v47 = vrot.slane %v1290_v20, 4 }
 0x9a2   :  { %v1292_v43 = vadd.f32 %v1291_v47, %v1290_v20 }
 0x9a4   :  { %v1293_v29 = vrot.slane %v1292_v43, 2 }
 0x9a6   :  { %v1294_v32 = vadd.f32 %v1293_v29, %v1292_v43 }
 0x9a8   :  { %v1295_v45 = vrot.slane %v1294_v32, 1 }
 0x9aa   :  { %v1296_v53 = vadd.f32 %v1295_v45, %v1294_v32 }
 0x9ac   :  { %v1297_v57 = vmul.f32 0.25, %v1296_v53 }
 0x9ae   :  { %v1298_v3 = vadd.f32 1e-05, %v1297_v57 }
 0x9b0   :  { %2018 = vrsqrt.f32 %v1298_v3 }
 0x9b1   :  { %2020 = vrcp.f32 %v1535_v21 }
 0x9bd   :  { %v2019_v54 = vpop.eup %2018 }
 0x9be   :  { %v1300_v5 = vmul.f32 %v2019_v54, %v1288_v36  ;;  %v2021_v58 = vpop.eup %2020 }
 0x9bf   :  { %v1538_v1 = vmul.f32 %v2021_v58, %v2017_v56  ;;  %v1537_v49 = vmul.f32 %v2021_v58, %v2660_v61 }
 0x9c0   :  { %v1304_v51 = vmul.f32 %v2684_v55, %v1300_v5 }
 0x9c2   :  { %v1308_v9 = vadd.f32 %v2686_v41, %v1304_v51 }
 0x9c4   :  { %v1309_v23 = vmax.f32 %v1308_v9, 0.0 }
 0x9c6   :  { %1941 = vmatpush3.msk.msra.mxu0 %vm1318_vm14, %v1309_v23 }
 0x9c7   :  { %1943 = vmatmul.mubr.msk.f32.vlgmr.msra.gmra.mxu0 %vm1315_vm15, %v2690_v15  ;;  %1569 = vmatprep.subr.mxu0 %v1538_v1 }
 0x9c8   :  { %1570 = vmatpush1.xpose.msra.mxu0 %v1537_v49  ;;  %1603 = vmatprep.mubr.f32.mxu0 %v2614_v12 }
 0x9c9   :  { %1955 = vmatprep.subr.mxu0 %v2039_v4 }
 0x9cb   :  { %1604 = vmatmul.mubr.f32.vlgmr.msra.gmra.mxu0 %v2612_v60 }
 0x9cc   :  { %1957 = vmatprep.mubr.msk.f32.mxu0 %vm2047_vm12, %v2039_v4 }
 0xa87   :  { %v1388_v2 = vpop.f32.mrf.mxu0 }
 0xa88   :  { %v1389_v6 = vadd.f32 %v1388_v2, %v2701_v30 }
 0xa89   :  { %v1944_v52 = vpop.f32.mrf.mxu0 }
 0xa8a   :  { %1946 = vmatpush3.msra.mxu1 %v1389_v6 }
 0xa8b   :  { %1948 = vmatmul.mubr.msk.f32.vlgmr.msra.gmra.mxu1 %vm811_vm9, %v2704_v44  ;;  %v1605_v12 = vpop.f32.mrf.mxu0  ;;  %1950 = vmatprep.subr.mxu1 %v2039_v4 }
 0xa8c   :  { %v1609_v60 = vmul.f32 %v1605_v12, %v2649_v8  ;;  %1952 = vmatprep.mubr.msk.f32.mxu1 %vm2047_vm12, %v2039_v4 }
 0xa8d   :  { %v1607_v35 = vpop.f32.mrf.mxu0 }
 0xa8e   :  { %v1610_v10 = vsel %vm1197_vm11, %v1609_v60, 0.0 }
 0xa8f   :  { %1611 = vadd.xlane.f32.xlu0 %v1610_v10 }
 0xb18   :  { %v1612_v14 = vpop.xlane.xlu0 %1611 }
 0xb19   :  { %1951 = vmatpush3.msra.mxu1 %v1612_v14 }
 0xb1a   :  { %1953 = vmatmul.mubr.msk.f32.vlgmr.msra.gmra.mxu1 %vm811_vm9, %v2657_v59  ;;  %1960 = vmatprep.subr.mxu1 %v2039_v4 }
 0xb1b   :  { %1962 = vmatprep.mubr.msk.f32.mxu1 %vm2047_vm12, %v2039_v4 }
 0xb4b   :  { %v1462_v11 = vpop.f32.mrf.mxu1 }
 0xb4c   :  { %1468 = vperm.xlu1 %2000, %v1462_v11  }
 0xb4d   :  { %v1949_v8 = vpop.f32.mrf.mxu1 }
 0xb50   :  { %2001 = vset.pattern.permute.xlu1 %v2054_v46 }
 0xb51   :  { %1474 = vperm.xlu1 %2001, %v2425_v28  }
 0xb55   :  { %2002 = vset.pattern.permute.xlu1 %v2041_v27 }
 0xbc7   :  { %v1469_v17 = vpop.permute.xlu1 %1468 }
 0xbc8   :  { %v1471_v18 = vadd.f32 %v1469_v17, %v2645_v48  ;;  %v1472_v61 = vadd.f32 %v1469_v17, %v2647_v13 }
 0xbcc   :  { %v2722_v59 = vpop.permute.xlu1 %1474 }
 0xbcd   :  { %v1477_v56 = vadd.f32 %v2722_v59, %v1471_v18  ;;  %v1478_v4 = vadd.f32 %v2722_v59, %v1472_v61 }
 0xbcf   :  { %v1479_v63 = vadd.f32 %v1478_v4, %v1477_v56 }
 0xbd1   :  { %1480 = vadd.xlane.f32.xlu0 %v1479_v63 }
 0xbda   :  { %v1679_v22 = vpop.f32.mrf.mxu1 }
 0xbdb   :  { %v1680_v34 = vadd.f32 %v1679_v22, %v2679_v7  ;;  %v2029_v22 = vld [vmem:[%s2765_s0 + $0x8] sm:$0xff] }
 0xbdc   :  { %v1954_v31 = vpop.f32.mrf.mxu1 }
 0xbdd   :  { %v1683_v28 = vsel %vm1278_vm13, %v1680_v34, 0.0 }
 0xbde   :  { %v1684_v27 = vrot.slane %v1683_v28, 4 }
 0xbe0   :  { %v1685_v37 = vadd.f32 %v1684_v27, %v1683_v28 }
 0xbe2   :  { %v1686_v38 = vrot.slane %v1685_v37, 2 }
 0xbe4   :  { %v1687_v48 = vadd.f32 %v1686_v38, %v1685_v37 }
 0xbe6   :  { %v1688_v26 = vrot.slane %v1687_v48, 1 }
 0xbe8   :  { %v1689_v13 = vadd.f32 %v1688_v26, %v1687_v48 }
 0xbea   :  { %v1690_v24 = vmul.f32 0.25, %v1689_v13 }
 0xbec   :  { %v1691_v25 = vsub.f32 %v1680_v34, %v1690_v24 }
 0xbee   :  { %v1692_v16 = vmul.f32 %v1691_v25, %v1691_v25 }
 0xbf0   :  { %v1693_v0 = vsel %vm1278_vm13, %v1692_v16, 0.0 }
 0xbf1   :  { %v1694_v62 = vrot.slane %v1693_v0, 4 }
 0xbf3   :  { %v1695_v42 = vadd.f32 %v1694_v62, %v1693_v0 }
 0xbf5   :  { %v1696_v40 = vrot.slane %v1695_v42, 2 }
 0xbf7   :  { %v1697_v39 = vadd.f32 %v1696_v40, %v1695_v42 }
 0xbf9   :  { %v1698_v36 = vrot.slane %v1697_v39, 1 }
 0xbfb   :  { %v1699_v7 = vadd.f32 %v1698_v36, %v1697_v39 }
 0xbfd   :  { %v1700_v50 = vmul.f32 0.25, %v1699_v7 }
 0xbff   :  { %v1701_v20 = vadd.f32 1e-05, %v1700_v50 }
 0xc01   :  { %2022 = vrsqrt.f32 %v1701_v20 }
 0xc0e   :  { %v2023_v47 = vpop.eup %2022 }
 0xc0f   :  { %v1703_v43 = vmul.f32 %v2023_v47, %v1691_v25 }
 0xc11   :  { %v1704_v29 = vmul.f32 %v1703_v43, %v2684_v55 }
 0xc13   :  { %v1705_v32 = vadd.f32 %v1704_v29, %v2686_v41 }
 0xc15   :  { %v1706_v45 = vmax.f32 %v1705_v32, 0.0 }
 0xc17   :  { %1956 = vmatpush3.msk.msra.mxu0 %vm1318_vm14, %v1706_v45 }
 0xc18   :  { %1958 = vmatmul.mubr.msk.f32.vlgmr.msra.gmra.mxu0 %vm1315_vm15, %v2690_v15 }
 0xc5a   :  { %v1481_v53 = vpop.xlane.xlu0 %1480 }
 0xc5b   :  { %v1482_v57 = vrot.slane %v1481_v53, 4 }
 0xc5d   :  { %v1483_v3 = vadd.f32 %v1482_v57, %v1481_v53 }
 0xc5f   :  { %v1484_v21 = vrot.slane %v1483_v3, 2 }
 0xc61   :  { %v1485_v54 = vadd.f32 %v1484_v21, %v1483_v3 }
 0xc63   :  { %v1486_v5 = vrot.slane %v1485_v54, 1 }
 0xc65   :  { %v1487_v51 = vadd.f32 %v1486_v5, %v1485_v54 }
 0xc67   :  { %1965 = vpush %v1487_v51 }
 0xc98   :  { %s1966_s12 = spop %1965 }
 0xc99   :  { %v1489_v58 = vstv %s1966_s12 }
 0xc9a   :  { %v1491_v9 = vmul.f32 0.00048828125, %v1489_v58 }
 0xc9c   :  { %v1492_v55 = vsub.f32 %v1477_v56, %v1491_v9  ;;  %v1493_v23 = vsub.f32 %v1478_v4, %v1491_v9 }
 0xc9e   :  { %v1494_v41 = vmul.f32 %v1492_v55, %v1492_v55  ;;  %v1495_v1 = vmul.f32 %v1493_v23, %v1493_v23 }
 0xca0   :  { %v1496_v49 = vadd.f32 %v1495_v1, %v1494_v41  ;;  %v2030_v41 = vld [vmem:[%s2765_s0 + $0x10] sm:$0xff] }
 0xca2   :  { %1497 = vadd.xlane.f32.xlu0 %v1496_v49  ;;  %v2031_v49 = vld [vmem:[%s2765_s0 + $0x18] sm:$0xff] }
 0xcd8   :  { %v1776_v2 = vpop.f32.mrf.mxu0 }
 0xcd9   :  { %v1777_v15 = vadd.f32 %v1776_v2, %v2701_v30 }
 0xcda   :  { %v1959_v6 = vpop.f32.mrf.mxu0 }
 0xcdb   :  { %1961 = vmatpush3.msra.mxu1 %v1777_v15 }
 0xcdc   :  { %1963 = vmatmul.mubr.msk.f32.vlgmr.msra.gmra.mxu1 %vm811_vm9, %v2704_v44  ;;  %v2028_v44 = vld [vmem:[%s2765_s0] sm:$0xff] }
 0xd2b   :  { %v1498_v52 = vpop.xlane.xlu0 %1497 }
 0xd2c   :  { %v1499_v12 = vrot.slane %v1498_v52, 4 }
 0xd2e   :  { %v1500_v60 = vadd.f32 %v1499_v12, %v1498_v52 }
 0xd30   :  { %v1501_v35 = vrot.slane %v1500_v60, 2 }
 0xd32   :  { %v1502_v10 = vadd.f32 %v1501_v35, %v1500_v60 }
 0xd34   :  { %v1503_v14 = vrot.slane %v1502_v10, 1 }
 0xd36   :  { %v1504_v11 = vadd.f32 %v1503_v14, %v1502_v10 }
 0xd38   :  { %1967 = vpush %v1504_v11 }
 0xd69   :  { %s1968_s13 = spop %1967 }
 0xd6a   :  { %v1506_v8 = vstv %s1968_s13 }
 0xd6b   :  { %v1507_v46 = vmul.f32 0.00048828125, %v1506_v8 }
 0xd6d   :  { %v1508_v17 = vadd.f32 1e-05, %v1507_v46 }
 0xd6f   :  { %2024 = vrsqrt.f32 %v1508_v17 }
 0xd7c   :  { %v2025_v18 = vpop.eup %2024 }
 0xd7d   :  { %v1510_v30 = vmul.f32 %v2025_v18, %v1492_v55  ;;  %v1511_v61 = vmul.f32 %v2025_v18, %v1493_v23 }
 0xd7f   :  { %v1512_v56 = vmax.f32 %v1510_v30, 0.0  ;;  %v1513_v4 = vmax.f32 %v1511_v61, 0.0 }
 0xd81   :  { %v1514_v63 = vadd.f32 %v2028_v44, %v1512_v56  ;;  %v1515_v34 = vadd.f32 %v2029_v22, %v1513_v4 }
 0xd83   :  { %v1516_v31 = vmax.f32 %v1514_v63, 0.0  ;;  %v1517_v28 = vmax.f32 %v1515_v34, 0.0 }
 0xd85   :  { %1518 = vst [vmem:[%s2770_s5] sm:$0xff] %v1516_v31  ;;  %1519 = vst [vmem:[%s2770_s5 + $0x8] sm:$0xff] %v1517_v28 }
 0xd9c   :  { %v1846_v27 = vpop.f32.mrf.mxu1 }
 0xd9d   :  { %1852 = vperm.xlu1 %2002, %v1846_v27  }
 0xd9e   :  { %v1964_v37 = vpop.f32.mrf.mxu1 }
 0xe18   :  { %v1853_v38 = vpop.permute.xlu1 %1852 }
 0xe19   :  { %v1855_v48 = vadd.f32 %v1853_v38, %v2675_v19  ;;  %v1856_v26 = vadd.f32 %v1853_v38, %v2677_v33 }
 0xe1b   :  { %v1857_v13 = vadd.f32 %v1855_v48, %v2722_v59  ;;  %v1858_v24 = vadd.f32 %v1856_v26, %v2722_v59 }
 0xe1d   :  { %v1859_v25 = vadd.f32 %v1858_v24, %v1857_v13 }
 0xe1f   :  { %1860 = vadd.xlane.f32.xlu1 %v1859_v25 }
 0xea8   :  { %v1861_v16 = vpop.xlane.xlu1 %1860 }
 0xea9   :  { %v1862_v0 = vrot.slane %v1861_v16, 4 }
 0xeab   :  { %v1863_v62 = vadd.f32 %v1862_v0, %v1861_v16 }
 0xead   :  { %v1864_v42 = vrot.slane %v1863_v62, 2 }
 0xeaf   :  { %v1865_v40 = vadd.f32 %v1864_v42, %v1863_v62 }
 0xeb1   :  { %v1866_v39 = vrot.slane %v1865_v40, 1 }
 0xeb3   :  { %v1867_v36 = vadd.f32 %v1866_v39, %v1865_v40 }
 0xeb5   :  { %1969 = vpush %v1867_v36 }
 0xee6   :  { %s1970_s23 = spop %1969 }
 0xee7   :  { %v1869_v7 = vstv %s1970_s23 }
 0xee8   :  { %v1870_v50 = vmul.f32 0.00048828125, %v1869_v7 }
 0xeea   :  { %v1871_v19 = vsub.f32 %v1857_v13, %v1870_v50  ;;  %v1872_v20 = vsub.f32 %v1858_v24, %v1870_v50 }
 0xeec   :  { %v1873_v33 = vmul.f32 %v1871_v19, %v1871_v19  ;;  %v1874_v47 = vmul.f32 %v1872_v20, %v1872_v20 }
 0xeee   :  { %v1875_v43 = vadd.f32 %v1874_v47, %v1873_v33 }
 0xef0   :  { %1876 = vadd.xlane.f32.xlu0 %v1875_v43 }
 0xf79   :  { %v1877_v59 = vpop.xlane.xlu0 %1876 }
 0xf7a   :  { %v1878_v29 = vrot.slane %v1877_v59, 4 }
 0xf7c   :  { %v1879_v32 = vadd.f32 %v1878_v29, %v1877_v59 }
 0xf7e   :  { %v1880_v45 = vrot.slane %v1879_v32, 2 }
 0xf80   :  { %v1881_v53 = vadd.f32 %v1880_v45, %v1879_v32 }
 0xf82   :  { %v1882_v57 = vrot.slane %v1881_v53, 1 }
 0xf84   :  { %v1883_v3 = vadd.f32 %v1882_v57, %v1881_v53 }
 0xf86   :  { %1971 = vpush %v1883_v3 }
 0xfb7   :  { %s1972_s24 = spop %1971 }
 0xfb8   :  { %v1885_v21 = vstv %s1972_s24 }
 0xfb9   :  { %v1886_v54 = vmul.f32 0.00048828125, %v1885_v21 }
 0xfbb   :  { %v1887_v5 = vadd.f32 1e-05, %v1886_v54 }
 0xfbd   :  { %2026 = vrsqrt.f32 %v1887_v5 }
 0xfca   :  { %v2027_v51 = vpop.eup %2026 }
 0xfcb   :  { %v1889_v58 = vmul.f32 %v2027_v51, %v1871_v19  ;;  %v1890_v9 = vmul.f32 %v2027_v51, %v1872_v20 }
 0xfcd   :  { %v1891_v55 = vmax.f32 %v1889_v58, 0.0  ;;  %v1892_v23 = vmax.f32 %v1890_v9, 0.0 }
 0xfcf   :  { %v1893_v1 = vadd.f32 %v2030_v41, %v1891_v55  ;;  %v1894_v2 = vadd.f32 %v2031_v49, %v1892_v23 }
 0xfd1   :  { %v1895_v15 = vmax.f32 %v1893_v1, 0.0  ;;  %v1896_v6 = vmax.f32 %v1894_v2, 0.0 }
 0xfd3   :  { %1897 = vst [vmem:[%s2770_s5 + $0x10] sm:$0xff] %v1895_v15  ;;  %1898 = vst [vmem:[%s2770_s5 + $0x18] sm:$0xff] %v1896_v6 }

</bundles_post_ra>
